<compile_context>
chip_gen: v5e
topology: v5e:2x2
jax: 0.10.0
libtpu: 0.0.40
codegen_flags: <defaults>
</compile_context>

<pallas_src>
import functools
import math

import numpy as np
import jax
import jax.numpy as jnp
from jax.experimental import pallas as pl
from jax.experimental.pallas import tpu as pltpu


# ----------------------------------------------------------------------------
# Host-side parameter preparation (layout only -- free restructuring).
# ----------------------------------------------------------------------------
def prepare_params(raw, *, num_heads, src_len, max_len):
    """Fuse QKV weights and build the concatenated relative-position table.

    Table layout (H, hd, 6S):
      columns [0,   2S): quaver_Er[max_len-S : max_len+S]
      columns [2S,  4S): beat_Er[(max_len-S)//4  : (max_len+S)//4 ] repeated 4x
      columns [4S,  6S): bar_Er [(max_len-S)//16 : (max_len+S)//16] repeated 16x
    so that QEr_all[h, i, c] = q[h, i, :] . table[:, c], and every torch skew becomes a
    static column-band slice in the kernel (shift(i) = i / 4*(i//4) / 16*(i//16); the
    selected columns never wrap around the window, so torch.roll's wrap is irrelevant).
    """
    H = num_heads
    D = raw["wq"].shape[0]
    hd = D // H
    S = src_len
    assert S % 16 == 0 and max_len % 16 == 0 and S <= max_len, \
        "this implementation assumes src_len and max_len are multiples of 16"

    wqkv = jnp.concatenate([raw["wq"], raw["wk"], raw["wv"]], axis=1)   # (D, 3D)
    bqkv = jnp.concatenate([raw["bq"], raw["bk"], raw["bv"]], axis=1)   # (1, 3D)

    quaver = raw["quaver_Er"][:, max_len - S:max_len + S, :]                    # (H, 2S, hd)
    beat = raw["beat_Er"][:, (max_len - S) // 4:(max_len + S) // 4, :]          # (H, 2S/4, hd)
    bar = raw["bar_Er"][:, (max_len - S) // 16:(max_len + S) // 16, :]          # (H, 2S/16, hd)
    beat_e = jnp.repeat(beat, 4, axis=1)                                        # (H, 2S, hd)
    bar_e = jnp.repeat(bar, 16, axis=1)                                         # (H, 2S, hd)
    assert beat_e.shape[1] == 2 * S and bar_e.shape[1] == 2 * S

    tbl = jnp.concatenate([quaver, beat_e, bar_e], axis=1)                      # (H, 6S, hd)
    tbl = jnp.transpose(tbl, (0, 2, 1))                                         # (H, hd, 6S) lane-dense

    bf = lambda a: a.astype(jnp.bfloat16)
    return dict(
        wqkv=bf(wqkv), bqkv=bqkv.astype(jnp.float32), tbl=bf(tbl),
        w1=bf(raw["w1"]), b1=raw["b1"], w2=bf(raw["w2"]), b2=raw["b2"],
        g1=raw["g1"], beta1=raw["beta1"], g2=raw["g2"], beta2=raw["beta2"],
    )


# ----------------------------------------------------------------------------
# Pallas kernel: one batch element per (parallel) grid step, fully fused.
# ----------------------------------------------------------------------------
def encoder_layer_kernel(x_ref, wqkv_ref, bqkv_ref, tbl_ref,
                         w1_ref, b1_ref, w2_ref, b2_ref,
                         g1_ref, be1_ref, g2_ref, be2_ref,
                         o_ref, attn_acc_ref,
                         *, num_heads, head_dim, eps):
    _, S, D = x_ref.shape
    H, hd = num_heads, head_dim
    bf16, f32 = jnp.bfloat16, jnp.float32

    x = x_ref[0]                                               # (S, D) f32
    xb = x.astype(bf16)

    # ---- fused QKV projection: one MXU matmul (S, D) x (D, 3D) ----
    qkv = jnp.dot(xb, wqkv_ref[...], preferred_element_type=f32) + bqkv_ref[...]   # (S, 3D)

    # ---- split heads: three (H, S, hd) stacks (static lane slices, no per-head matmuls)
    def heads(base):
        return jnp.stack([qkv[:, base + h * hd: base + (h + 1) * hd]
                          for h in range(H)], axis=0)
    qh = heads(0).astype(bf16)          # (H, S, hd)
    kh = heads(D).astype(bf16)
    vh = heads(2 * D).astype(bf16)

    # ---- content scores, batched over heads on the MXU ----
    scores = jnp.einsum('hqd,hkd->hqk', qh, kh, preferred_element_type=f32)     # (H, S, S)

    # ---- relative-position scores: one batched MXU matmul against all three tables ----
    qer = jnp.einsum('hqd,hdc->hqc', qh, tbl_ref[...], preferred_element_type=f32)  # (H, S, 6S)

    # skews as static band slices (Srel[i, j] = QEr[i, S + j - shift(i)], no wrap-around):
    #   quaver: shift(i) = i        beat: shift(i) = 4*(i//4)       bar: shift(i) = 16*(i//16)
    sq = jnp.concatenate(
        [qer[:, i:i + 1, S - i:2 * S - i] for i in range(S)], axis=1)
    sb = jnp.concatenate(
        [qer[:, 4 * g:4 * (g + 1), 3 * S - 4 * g:4 * S - 4 * g] for g in range(S // 4)], axis=1)
    sr = jnp.concatenate(
        [qer[:, 16 * g:16 * (g + 1), 5 * S - 16 * g:6 * S - 16 * g] for g in range(S // 16)], axis=1)

    logits = (scores + sq + sb + sr) * (1.0 / math.sqrt(hd))

    # ---- softmax in f32 (EUP exp + approx reciprocal) ----
    logits = logits - jnp.max(logits, axis=-1, keepdims=True)
    p = jnp.exp(logits)
    attn = p * pl.reciprocal(jnp.sum(p, axis=-1, keepdims=True), approx=True)

    # ---- attention output, batched over heads ----
    out_h = jnp.einsum('hqk,hkd->hqd', attn.astype(bf16), vh,
                       preferred_element_type=f32)             # (H, S, hd)

    # merge heads into (S, D) via VMEM scratch (avoids lane-concat relayouts)
    for h in range(H):
        attn_acc_ref[:, h * hd:(h + 1) * hd] = out_h[h]
    attn_out = attn_acc_ref[...]

    # ---- residual + LayerNorm 1 (f32 stats) ----
    y = x + attn_out
    mu = jnp.mean(y, axis=-1, keepdims=True)
    var = jnp.mean((y - mu) * (y - mu), axis=-1, keepdims=True)
    y = (y - mu) * jax.lax.rsqrt(var + eps) * g1_ref[...] + be1_ref[...]

    # ---- feed-forward: linear2(relu(linear1(y))) ----
    hdn = jnp.dot(y.astype(bf16), w1_ref[...], preferred_element_type=f32) + b1_ref[...]
    hdn = jnp.maximum(hdn, 0.0)
    ff = jnp.dot(hdn.astype(bf16), w2_ref[...], preferred_element_type=f32) + b2_ref[...]

    # ---- residual + LayerNorm 2 ----
    z = y + ff
    mu2 = jnp.mean(z, axis=-1, keepdims=True)
    var2 = jnp.mean((z - mu2) * (z - mu2), axis=-1, keepdims=True)
    o_ref[0] = (z - mu2) * jax.lax.rsqrt(var2 + eps) * g2_ref[...] + be2_ref[...]


def transformer_encoder_layer(x, params, *, num_heads, eps=1e-5):
    bs, S, D = x.shape
    hd = D // num_heads
    FF = params["w1"].shape[1]

    kernel = functools.partial(encoder_layer_kernel, num_heads=num_heads,
                               head_dim=hd, eps=eps)

    const = lambda shape: pl.BlockSpec(shape, lambda b: (0,) * len(shape))
    in_specs = [
        pl.BlockSpec((1, S, D), lambda b: (b, 0, 0)),        # x
        const((D, 3 * D)), const((1, 3 * D)),                # fused Wqkv (bf16), bias (f32)
        const((num_heads, hd, 6 * S)),                       # relative tables (bf16)
        const((D, FF)), const((1, FF)),                      # W1, b1
        const((FF, D)), const((1, D)),                       # W2, b2
        const((1, D)), const((1, D)),                        # norm1 gamma, beta
        const((1, D)), const((1, D)),                        # norm2 gamma, beta
    ]
    out_specs = pl.BlockSpec((1, S, D), lambda b: (b, 0, 0))

    return pl.pallas_call(
        kernel,
        out_shape=jax.ShapeDtypeStruct((bs, S, D), jnp.float32),
        grid=(bs,),
        in_specs=in_specs,
        out_specs=out_specs,
        scratch_shapes=[pltpu.VMEM((S, D), jnp.float32)],     # head-merge accumulator
        compiler_params=pltpu.CompilerParams(
            dimension_semantics=("parallel",),                # batch across TCs on v7x
            vmem_limit_bytes=32 * 1024 * 1024,
        ),
    )(x, params["wqkv"], params["bqkv"], params["tbl"],
      params["w1"], params["b1"], params["w2"], params["b2"],
      params["g1"], params["beta1"], params["g2"], params["beta2"])


# ----------------------------------------------------------------------------
# Independent pure-JAX reference (replays the torch skew ops on integer ids).
# Used only for a self-check in __main__.
# ----------------------------------------------------------------------------
def _skew_quaver_indices(S):
    src_L = 2 * S
    cols = np.broadcast_to(np.arange(src_L), (S, src_L))
    rows = np.broadcast_to(np.arange(S)[:, None], (S, src_L))
    comb = rows * (src_L + 1) + cols + 1
    comb = np.pad(comb, ((0, 0), (0, 1)))
    comb = comb.reshape(-1)
    comb = np.pad(comb, (0, src_L - S))
    comb = comb.reshape(S + 1, src_L)
    comb = comb[:S, -S:]
    assert np.all(comb > 0)
    comb = comb - 1
    r, c = comb // (src_L + 1), comb % (src_L + 1)
    assert np.all(r == np.arange(S)[:, None])
    return c.astype(np.int32)


def _skew_block_indices(S, Lb, rep):
    W = Lb * rep
    assert W >= S
    A = np.repeat(np.broadcast_to(np.arange(Lb), (S, Lb)), rep, axis=-1).copy()
    for g in range(S // rep):
        A[g * rep:(g + 1) * rep, :] = np.roll(A[g * rep:(g + 1) * rep, :],
                                              shift=g * rep, axis=-1)
    return A[:S, -S:].astype(np.int32)


def reference_forward(x, raw, *, num_heads, max_len, eps=1e-5):
    bs, S, D = x.shape
    H, hd = num_heads, D // num_heads
    bf16, f32 = jnp.bfloat16, jnp.float32

    wq, wk, wv = raw["wq"].astype(bf16), raw["wk"].astype(bf16), raw["wv"].astype(bf16)
    w1, w2 = raw["w1"].astype(bf16), raw["w2"].astype(bf16)

    xb = x.astype(bf16)
    q = jnp.einsum('bsd,de->bse', xb, wq, preferred_element_type=f32) + raw["bq"]
    k = jnp.einsum('bsd,de->bse', xb, wk, preferred_element_type=f32) + raw["bk"]
    v = jnp.einsum('bsd,de->bse', xb, wv, preferred_element_type=f32) + raw["bv"]
    qh = q.reshape(bs, S, H, hd).transpose(0, 2, 1, 3).astype(bf16)
    kh = k.reshape(bs, S, H, hd).transpose(0, 2, 1, 3).astype(bf16)
    vh = v.reshape(bs, S, H, hd).transpose(0, 2, 1, 3).astype(bf16)

    quaver = raw["quaver_Er"].astype(bf16)[:, max_len - S:max_len + S, :]
    beat = raw["beat_Er"].astype(bf16)[:, (max_len - S) // 4:(max_len + S) // 4, :]
    bar = raw["bar_Er"].astype(bf16)[:, (max_len - S) // 16:(max_len + S) // 16, :]
    Iq = _skew_quaver_indices(S)
    Ib = _skew_block_indices(S, beat.shape[1], 4)
    Ir = _skew_block_indices(S, bar.shape[1], 16)
    erel = (quaver[:, Iq, :].astype(f32) + beat[:, Ib, :].astype(f32)
            + bar[:, Ir, :].astype(f32))                      # (H, S, S, hd)

    scores = jnp.einsum('bhqd,bhkd->bhqk', qh, kh, preferred_element_type=f32)
    srel = jnp.einsum('bhqd,hqkd->bhqk', qh.astype(f32), erel, preferred_element_type=f32)
    attn = jax.nn.softmax((scores + srel) / math.sqrt(hd), axis=-1)
    out = jnp.einsum('bhqk,bhkd->bhqd', attn.astype(bf16), vh, preferred_element_type=f32)
    out = out.transpose(0, 2, 1, 3).reshape(bs, S, D)

    def ln(t, g, b):
        mu = jnp.mean(t, axis=-1, keepdims=True)
        var = jnp.mean((t - mu) ** 2, axis=-1, keepdims=True)
        return (t - mu) * jax.lax.rsqrt(var + eps) * g + b

    y = ln(x + out, raw["g1"], raw["beta1"])
    h1 = jnp.maximum(
        jnp.einsum('bsd,df->bsf', y.astype(bf16), w1, preferred_element_type=f32) + raw["b1"], 0.0)
    ff = jnp.einsum('bsf,fd->bsd', h1.astype(bf16), w2, preferred_element_type=f32) + raw["b2"]
    return ln(y + ff, raw["g2"], raw["beta2"])


# ----------------------------------------------------------------------------
# Main
# ----------------------------------------------------------------------------
if __name__ == "__main__":
    bs, S, D, H, FF, max_len = 2, 16, 32, 4, 64, 128
    hd = D // H
    L = 2 * max_len - 1

    key = jax.random.PRNGKey(0)
    keys = jax.random.split(key, 16)

    def init(k, shape, scale=0.1):
        return (scale * jax.random.normal(k, shape)).astype(jnp.float32)

    raw = dict(
        wq=init(keys[0], (D, D)), bq=init(keys[1], (1, D)),
        wk=init(keys[2], (D, D)), bk=init(keys[3], (1, D)),
        wv=init(keys[4], (D, D)), bv=init(keys[5], (1, D)),
        w1=init(keys[6], (D, FF)), b1=init(keys[7], (1, FF)),
        w2=init(keys[8], (FF, D)), b2=init(keys[9], (1, D)),
        g1=jnp.ones((1, D), jnp.float32), beta1=jnp.zeros((1, D), jnp.float32),
        g2=jnp.ones((1, D), jnp.float32), beta2=jnp.zeros((1, D), jnp.float32),
        quaver_Er=init(keys[10], (H, L, hd), scale=1.0),
        beat_Er=init(keys[11], (H, L // 4, hd), scale=1.0),
        bar_Er=init(keys[12], (H, L // 16, hd), scale=1.0),
    )
    x = jax.random.normal(keys[13], (bs, S, D), dtype=jnp.float32)

    params = prepare_params(raw, num_heads=H, src_len=S, max_len=max_len)
    out = transformer_encoder_layer(x, params, num_heads=H, eps=1e-5)
    out = jax.block_until_ready(out)

    ref = jax.block_until_ready(reference_forward(x, raw, num_heads=H, max_len=max_len, eps=1e-5))

    assert out.shape == (bs, S, D)
    assert bool(jnp.all(jnp.isfinite(out)))
    max_err = float(jnp.max(jnp.abs(out - ref)))
    assert max_err < 5e-2, f"kernel/reference mismatch: max abs err = {max_err}"
    print("KERNEL_OK")
</pallas_src>

<mosaic_0001>
module attributes {stable_mosaic.version = 11 : i64} {
  func.func @encoder_layer_kernel(%arg0: i32, %arg1: memref<1x16x32xf32, #tpu.memory_space<vmem>>, %arg2: memref<32x96xbf16, #tpu.memory_space<vmem>>, %arg3: memref<1x96xf32, #tpu.memory_space<vmem>>, %arg4: memref<4x8x96xbf16, #tpu.memory_space<vmem>>, %arg5: memref<32x64xbf16, #tpu.memory_space<vmem>>, %arg6: memref<1x64xf32, #tpu.memory_space<vmem>>, %arg7: memref<64x32xbf16, #tpu.memory_space<vmem>>, %arg8: memref<1x32xf32, #tpu.memory_space<vmem>>, %arg9: memref<1x32xf32, #tpu.memory_space<vmem>>, %arg10: memref<1x32xf32, #tpu.memory_space<vmem>>, %arg11: memref<1x32xf32, #tpu.memory_space<vmem>>, %arg12: memref<1x32xf32, #tpu.memory_space<vmem>>, %arg13: memref<1x16x32xf32, #tpu.memory_space<vmem>>, %arg14: memref<16x32xf32, #tpu.memory_space<vmem>>) attributes {dimension_semantics = [#tpu.dimension_semantics<parallel>], iteration_bounds = array<i64: 2>, scalar_prefetch = 0 : i64, scratch_operands = 1 : i64, tpu.core_type = #tpu.core_type<tc>, window_params = [{transform_indices = @transform_0, window_bounds = array<i64: 1, 16, 32>}, {pipeline_mode = #tpu.pipeline_mode<synchronous>, transform_indices = @transform_1, window_bounds = array<i64: 32, 96>}, {pipeline_mode = #tpu.pipeline_mode<synchronous>, transform_indices = @transform_2, window_bounds = array<i64: 1, 96>}, {pipeline_mode = #tpu.pipeline_mode<synchronous>, transform_indices = @transform_3, window_bounds = array<i64: 4, 8, 96>}, {pipeline_mode = #tpu.pipeline_mode<synchronous>, transform_indices = @transform_4, window_bounds = array<i64: 32, 64>}, {pipeline_mode = #tpu.pipeline_mode<synchronous>, transform_indices = @transform_5, window_bounds = array<i64: 1, 64>}, {pipeline_mode = #tpu.pipeline_mode<synchronous>, transform_indices = @transform_6, window_bounds = array<i64: 64, 32>}, {pipeline_mode = #tpu.pipeline_mode<synchronous>, transform_indices = @transform_7, window_bounds = array<i64: 1, 32>}, {pipeline_mode = #tpu.pipeline_mode<synchronous>, transform_indices = @transform_8, window_bounds = array<i64: 1, 32>}, {pipeline_mode = #tpu.pipeline_mode<synchronous>, transform_indices = @transform_9, window_bounds = array<i64: 1, 32>}, {pipeline_mode = #tpu.pipeline_mode<synchronous>, transform_indices = @transform_10, window_bounds = array<i64: 1, 32>}, {pipeline_mode = #tpu.pipeline_mode<synchronous>, transform_indices = @transform_11, window_bounds = array<i64: 1, 32>}, {transform_indices = @transform_12, window_bounds = array<i64: 1, 16, 32>}]} {
    %c0 = arith.constant 0 : index
    %c0_0 = arith.constant 0 : index
    %c0_1 = arith.constant 0 : index
    %0 = vector.load %arg1[%c0, %c0_0, %c0_1] : memref<1x16x32xf32, #tpu.memory_space<vmem>>, vector<1x16x32xf32>
    %1 = vector.shape_cast %0 : vector<1x16x32xf32> to vector<16x32xf32>
    %2 = arith.truncf %1 : vector<16x32xf32> to vector<16x32xbf16>
    %c0_2 = arith.constant 0 : index
    %c0_3 = arith.constant 0 : index
    %3 = vector.load %arg2[%c0_2, %c0_3] : memref<32x96xbf16, #tpu.memory_space<vmem>>, vector<32x96xbf16>
    %cst = arith.constant dense<0.000000e+00> : vector<16x96xf32>
    %4 = tpu.matmul %2, %3, %cst {dimension_numbers = #tpu.dot_dimension_numbers<[1], [0], [0], [1], [0, 0, 1, 1], [], []>} : vector<16x32xbf16>, vector<32x96xbf16>, vector<16x96xf32> -> vector<16x96xf32>
    %c0_4 = arith.constant 0 : index
    %c0_5 = arith.constant 0 : index
    %5 = vector.load %arg3[%c0_4, %c0_5] : memref<1x96xf32, #tpu.memory_space<vmem>>, vector<1x96xf32>
    %6 = vector.broadcast %5 : vector<1x96xf32> to vector<16x96xf32>
    %7 = arith.addf %4, %6 : vector<16x96xf32>
    %8 = vector.extract_strided_slice %7 {offsets = [0, 0], sizes = [16, 8], strides = [1, 1]} : vector<16x96xf32> to vector<16x8xf32>
    %9 = vector.extract_strided_slice %7 {offsets = [0, 8], sizes = [16, 8], strides = [1, 1]} : vector<16x96xf32> to vector<16x8xf32>
    %10 = vector.extract_strided_slice %7 {offsets = [0, 16], sizes = [16, 8], strides = [1, 1]} : vector<16x96xf32> to vector<16x8xf32>
    %11 = vector.extract_strided_slice %7 {offsets = [0, 24], sizes = [16, 8], strides = [1, 1]} : vector<16x96xf32> to vector<16x8xf32>
    %12 = vector.shape_cast %8 : vector<16x8xf32> to vector<1x16x8xf32>
    %13 = vector.shape_cast %9 : vector<16x8xf32> to vector<1x16x8xf32>
    %14 = vector.shape_cast %10 : vector<16x8xf32> to vector<1x16x8xf32>
    %15 = vector.shape_cast %11 : vector<16x8xf32> to vector<1x16x8xf32>
    %16 = tpu.concatenate %12, %13, %14, %15 in 0 : vector<1x16x8xf32>, vector<1x16x8xf32>, vector<1x16x8xf32>, vector<1x16x8xf32> -> vector<4x16x8xf32>
    %17 = arith.truncf %16 : vector<4x16x8xf32> to vector<4x16x8xbf16>
    %18 = vector.extract_strided_slice %7 {offsets = [0, 32], sizes = [16, 8], strides = [1, 1]} : vector<16x96xf32> to vector<16x8xf32>
    %19 = vector.extract_strided_slice %7 {offsets = [0, 40], sizes = [16, 8], strides = [1, 1]} : vector<16x96xf32> to vector<16x8xf32>
    %20 = vector.extract_strided_slice %7 {offsets = [0, 48], sizes = [16, 8], strides = [1, 1]} : vector<16x96xf32> to vector<16x8xf32>
    %21 = vector.extract_strided_slice %7 {offsets = [0, 56], sizes = [16, 8], strides = [1, 1]} : vector<16x96xf32> to vector<16x8xf32>
    %22 = vector.shape_cast %18 : vector<16x8xf32> to vector<1x16x8xf32>
    %23 = vector.shape_cast %19 : vector<16x8xf32> to vector<1x16x8xf32>
    %24 = vector.shape_cast %20 : vector<16x8xf32> to vector<1x16x8xf32>
    %25 = vector.shape_cast %21 : vector<16x8xf32> to vector<1x16x8xf32>
    %26 = tpu.concatenate %22, %23, %24, %25 in 0 : vector<1x16x8xf32>, vector<1x16x8xf32>, vector<1x16x8xf32>, vector<1x16x8xf32> -> vector<4x16x8xf32>
    %27 = arith.truncf %26 : vector<4x16x8xf32> to vector<4x16x8xbf16>
    %28 = vector.extract_strided_slice %7 {offsets = [0, 64], sizes = [16, 8], strides = [1, 1]} : vector<16x96xf32> to vector<16x8xf32>
    %29 = vector.extract_strided_slice %7 {offsets = [0, 72], sizes = [16, 8], strides = [1, 1]} : vector<16x96xf32> to vector<16x8xf32>
    %30 = vector.extract_strided_slice %7 {offsets = [0, 80], sizes = [16, 8], strides = [1, 1]} : vector<16x96xf32> to vector<16x8xf32>
    %31 = vector.extract_strided_slice %7 {offsets = [0, 88], sizes = [16, 8], strides = [1, 1]} : vector<16x96xf32> to vector<16x8xf32>
    %32 = vector.shape_cast %28 : vector<16x8xf32> to vector<1x16x8xf32>
    %33 = vector.shape_cast %29 : vector<16x8xf32> to vector<1x16x8xf32>
    %34 = vector.shape_cast %30 : vector<16x8xf32> to vector<1x16x8xf32>
    %35 = vector.shape_cast %31 : vector<16x8xf32> to vector<1x16x8xf32>
    %36 = tpu.concatenate %32, %33, %34, %35 in 0 : vector<1x16x8xf32>, vector<1x16x8xf32>, vector<1x16x8xf32>, vector<1x16x8xf32> -> vector<4x16x8xf32>
    %37 = arith.truncf %36 : vector<4x16x8xf32> to vector<4x16x8xbf16>
    "tpu.trace_start"() <{level = 10 : i32, message = "hqd,hkd->hqk"}> : () -> ()
    %cst_6 = arith.constant dense<0.000000e+00> : vector<4x16x16xf32>
    %38 = tpu.matmul %17, %27, %cst_6 {dimension_numbers = #tpu.dot_dimension_numbers<[2], [2], [1], [1], [0, 0, 0, 1, 1, 1], [0], [0]>} : vector<4x16x8xbf16>, vector<4x16x8xbf16>, vector<4x16x16xf32> -> vector<4x16x16xf32>
    "tpu.trace_stop"() : () -> ()
    %c0_7 = arith.constant 0 : index
    %c0_8 = arith.constant 0 : index
    %c0_9 = arith.constant 0 : index
    %39 = vector.load %arg4[%c0_7, %c0_8, %c0_9] : memref<4x8x96xbf16, #tpu.memory_space<vmem>>, vector<4x8x96xbf16>
    "tpu.trace_start"() <{level = 10 : i32, message = "hqd,hdc->hqc"}> : () -> ()
    %cst_10 = arith.constant dense<0.000000e+00> : vector<4x16x96xf32>
    %40 = tpu.matmul %17, %39, %cst_10 {dimension_numbers = #tpu.dot_dimension_numbers<[2], [1], [1], [2], [0, 0, 0, 1, 1, 2], [0], [0]>} : vector<4x16x8xbf16>, vector<4x8x96xbf16>, vector<4x16x96xf32> -> vector<4x16x96xf32>
    "tpu.trace_stop"() : () -> ()
    %41 = vector.extract_strided_slice %40 {offsets = [0, 0, 16], sizes = [4, 1, 16], strides = [1, 1, 1]} : vector<4x16x96xf32> to vector<4x1x16xf32>
    %42 = vector.extract_strided_slice %40 {offsets = [0, 1, 15], sizes = [4, 1, 16], strides = [1, 1, 1]} : vector<4x16x96xf32> to vector<4x1x16xf32>
    %43 = vector.extract_strided_slice %40 {offsets = [0, 2, 14], sizes = [4, 1, 16], strides = [1, 1, 1]} : vector<4x16x96xf32> to vector<4x1x16xf32>
    %44 = vector.extract_strided_slice %40 {offsets = [0, 3, 13], sizes = [4, 1, 16], strides = [1, 1, 1]} : vector<4x16x96xf32> to vector<4x1x16xf32>
    %45 = vector.extract_strided_slice %40 {offsets = [0, 4, 12], sizes = [4, 1, 16], strides = [1, 1, 1]} : vector<4x16x96xf32> to vector<4x1x16xf32>
    %46 = vector.extract_strided_slice %40 {offsets = [0, 5, 11], sizes = [4, 1, 16], strides = [1, 1, 1]} : vector<4x16x96xf32> to vector<4x1x16xf32>
    %47 = vector.extract_strided_slice %40 {offsets = [0, 6, 10], sizes = [4, 1, 16], strides = [1, 1, 1]} : vector<4x16x96xf32> to vector<4x1x16xf32>
    %48 = vector.extract_strided_slice %40 {offsets = [0, 7, 9], sizes = [4, 1, 16], strides = [1, 1, 1]} : vector<4x16x96xf32> to vector<4x1x16xf32>
    %49 = vector.extract_strided_slice %40 {offsets = [0, 8, 8], sizes = [4, 1, 16], strides = [1, 1, 1]} : vector<4x16x96xf32> to vector<4x1x16xf32>
    %50 = vector.extract_strided_slice %40 {offsets = [0, 9, 7], sizes = [4, 1, 16], strides = [1, 1, 1]} : vector<4x16x96xf32> to vector<4x1x16xf32>
    %51 = vector.extract_strided_slice %40 {offsets = [0, 10, 6], sizes = [4, 1, 16], strides = [1, 1, 1]} : vector<4x16x96xf32> to vector<4x1x16xf32>
    %52 = vector.extract_strided_slice %40 {offsets = [0, 11, 5], sizes = [4, 1, 16], strides = [1, 1, 1]} : vector<4x16x96xf32> to vector<4x1x16xf32>
    %53 = vector.extract_strided_slice %40 {offsets = [0, 12, 4], sizes = [4, 1, 16], strides = [1, 1, 1]} : vector<4x16x96xf32> to vector<4x1x16xf32>
    %54 = vector.extract_strided_slice %40 {offsets = [0, 13, 3], sizes = [4, 1, 16], strides = [1, 1, 1]} : vector<4x16x96xf32> to vector<4x1x16xf32>
    %55 = vector.extract_strided_slice %40 {offsets = [0, 14, 2], sizes = [4, 1, 16], strides = [1, 1, 1]} : vector<4x16x96xf32> to vector<4x1x16xf32>
    %56 = vector.extract_strided_slice %40 {offsets = [0, 15, 1], sizes = [4, 1, 16], strides = [1, 1, 1]} : vector<4x16x96xf32> to vector<4x1x16xf32>
    %57 = tpu.concatenate %41, %42, %43, %44, %45, %46, %47, %48, %49, %50, %51, %52, %53, %54, %55, %56 in 1 : vector<4x1x16xf32>, vector<4x1x16xf32>, vector<4x1x16xf32>, vector<4x1x16xf32>, vector<4x1x16xf32>, vector<4x1x16xf32>, vector<4x1x16xf32>, vector<4x1x16xf32>, vector<4x1x16xf32>, vector<4x1x16xf32>, vector<4x1x16xf32>, vector<4x1x16xf32>, vector<4x1x16xf32>, vector<4x1x16xf32>, vector<4x1x16xf32>, vector<4x1x16xf32> -> vector<4x16x16xf32>
    %58 = vector.extract_strided_slice %40 {offsets = [0, 0, 48], sizes = [4, 4, 16], strides = [1, 1, 1]} : vector<4x16x96xf32> to vector<4x4x16xf32>
    %59 = vector.extract_strided_slice %40 {offsets = [0, 4, 44], sizes = [4, 4, 16], strides = [1, 1, 1]} : vector<4x16x96xf32> to vector<4x4x16xf32>
    %60 = vector.extract_strided_slice %40 {offsets = [0, 8, 40], sizes = [4, 4, 16], strides = [1, 1, 1]} : vector<4x16x96xf32> to vector<4x4x16xf32>
    %61 = vector.extract_strided_slice %40 {offsets = [0, 12, 36], sizes = [4, 4, 16], strides = [1, 1, 1]} : vector<4x16x96xf32> to vector<4x4x16xf32>
    %62 = tpu.concatenate %58, %59, %60, %61 in 1 : vector<4x4x16xf32>, vector<4x4x16xf32>, vector<4x4x16xf32>, vector<4x4x16xf32> -> vector<4x16x16xf32>
    %63 = vector.extract_strided_slice %40 {offsets = [0, 0, 80], sizes = [4, 16, 16], strides = [1, 1, 1]} : vector<4x16x96xf32> to vector<4x16x16xf32>
    %64 = arith.addf %38, %57 : vector<4x16x16xf32>
    %65 = arith.addf %64, %62 : vector<4x16x16xf32>
    %66 = arith.addf %65, %63 : vector<4x16x16xf32>
    %cst_11 = arith.constant 0.353553385 : f32
    %67 = vector.broadcast %cst_11 : f32 to vector<4x16x16xf32>
    %68 = arith.mulf %66, %67 : vector<4x16x16xf32>
    %cst_12 = arith.constant dense<0xFF800000> : vector<4x16xf32>
    %69 = vector.multi_reduction <maximumf>, %68, %cst_12 [2] : vector<4x16x16xf32> to vector<4x16xf32>
    %70 = vector.shape_cast %69 : vector<4x16xf32> to vector<4x16x1xf32>
    %71 = vector.broadcast %70 : vector<4x16x1xf32> to vector<4x16x16xf32>
    %72 = arith.subf %68, %71 : vector<4x16x16xf32>
    %73 = math.exp %72 : vector<4x16x16xf32>
    %cst_13 = arith.constant dense<0.000000e+00> : vector<4x16xf32>
    %74 = vector.multi_reduction <add>, %73, %cst_13 [2] : vector<4x16x16xf32> to vector<4x16xf32>
    %75 = vector.shape_cast %74 : vector<4x16xf32> to vector<4x16x1xf32>
    %76 = tpu.reciprocal %75 {approx = true} : vector<4x16x1xf32> -> vector<4x16x1xf32>
    %77 = vector.broadcast %76 : vector<4x16x1xf32> to vector<4x16x16xf32>
    %78 = arith.mulf %73, %77 : vector<4x16x16xf32>
    %79 = arith.truncf %78 : vector<4x16x16xf32> to vector<4x16x16xbf16>
    "tpu.trace_start"() <{level = 10 : i32, message = "hqk,hkd->hqd"}> : () -> ()
    %cst_14 = arith.constant dense<0.000000e+00> : vector<4x16x8xf32>
    %80 = tpu.matmul %79, %37, %cst_14 {dimension_numbers = #tpu.dot_dimension_numbers<[2], [1], [1], [2], [0, 0, 0, 1, 1, 2], [0], [0]>} : vector<4x16x16xbf16>, vector<4x16x8xbf16>, vector<4x16x8xf32> -> vector<4x16x8xf32>
    "tpu.trace_stop"() : () -> ()
    %81 = vector.extract_strided_slice %80 {offsets = [0, 0, 0], sizes = [1, 16, 8], strides = [1, 1, 1]} : vector<4x16x8xf32> to vector<1x16x8xf32>
    %82 = vector.shape_cast %81 : vector<1x16x8xf32> to vector<16x8xf32>
    %c0_15 = arith.constant 0 : index
    %c0_16 = arith.constant 0 : index
    %83 = vector.load %arg14[%c0_15, %c0_16] : memref<16x32xf32, #tpu.memory_space<vmem>>, vector<16x8xf32>
    tpu.vector_store %arg14[%c0_15, %c0_16], %82 {strides = array<i32>} : memref<16x32xf32, #tpu.memory_space<vmem>>, vector<16x8xf32>,
    %84 = vector.extract_strided_slice %80 {offsets = [1, 0, 0], sizes = [1, 16, 8], strides = [1, 1, 1]} : vector<4x16x8xf32> to vector<1x16x8xf32>
    %85 = vector.shape_cast %84 : vector<1x16x8xf32> to vector<16x8xf32>
    %c0_17 = arith.constant 0 : index
    %c8 = arith.constant 8 : index
    %86 = vector.load %arg14[%c0_17, %c8] : memref<16x32xf32, #tpu.memory_space<vmem>>, vector<16x8xf32>
    tpu.vector_store %arg14[%c0_17, %c8], %85 {strides = array<i32>} : memref<16x32xf32, #tpu.memory_space<vmem>>, vector<16x8xf32>,
    %87 = vector.extract_strided_slice %80 {offsets = [2, 0, 0], sizes = [1, 16, 8], strides = [1, 1, 1]} : vector<4x16x8xf32> to vector<1x16x8xf32>
    %88 = vector.shape_cast %87 : vector<1x16x8xf32> to vector<16x8xf32>
    %c0_18 = arith.constant 0 : index
    %c16 = arith.constant 16 : index
    %89 = vector.load %arg14[%c0_18, %c16] : memref<16x32xf32, #tpu.memory_space<vmem>>, vector<16x8xf32>
    tpu.vector_store %arg14[%c0_18, %c16], %88 {strides = array<i32>} : memref<16x32xf32, #tpu.memory_space<vmem>>, vector<16x8xf32>,
    %90 = vector.extract_strided_slice %80 {offsets = [3, 0, 0], sizes = [1, 16, 8], strides = [1, 1, 1]} : vector<4x16x8xf32> to vector<1x16x8xf32>
    %91 = vector.shape_cast %90 : vector<1x16x8xf32> to vector<16x8xf32>
    %c0_19 = arith.constant 0 : index
    %c24 = arith.constant 24 : index
    %92 = vector.load %arg14[%c0_19, %c24] : memref<16x32xf32, #tpu.memory_space<vmem>>, vector<16x8xf32>
    tpu.vector_store %arg14[%c0_19, %c24], %91 {strides = array<i32>} : memref<16x32xf32, #tpu.memory_space<vmem>>, vector<16x8xf32>,
    %c0_20 = arith.constant 0 : index
    %c0_21 = arith.constant 0 : index
    %93 = vector.load %arg14[%c0_20, %c0_21] : memref<16x32xf32, #tpu.memory_space<vmem>>, vector<16x32xf32>
    %94 = arith.addf %1, %93 : vector<16x32xf32>
    %cst_22 = arith.constant dense<0.000000e+00> : vector<16xf32>
    %95 = vector.multi_reduction <add>, %94, %cst_22 [1] : vector<16x32xf32> to vector<16xf32>
    %96 = vector.shape_cast %95 : vector<16xf32> to vector<16x1xf32>
    %cst_23 = arith.constant 3.200000e+01 : f32
    %97 = vector.broadcast %cst_23 : f32 to vector<16x1xf32>
    %98 = arith.divf %96, %97 : vector<16x1xf32>
    %99 = vector.broadcast %98 : vector<16x1xf32> to vector<16x32xf32>
    %100 = arith.subf %94, %99 : vector<16x32xf32>
    %101 = vector.broadcast %98 : vector<16x1xf32> to vector<16x32xf32>
    %102 = arith.subf %94, %101 : vector<16x32xf32>
    %103 = arith.mulf %100, %102 : vector<16x32xf32>
    %cst_24 = arith.constant dense<0.000000e+00> : vector<16xf32>
    %104 = vector.multi_reduction <add>, %103, %cst_24 [1] : vector<16x32xf32> to vector<16xf32>
    %105 = vector.shape_cast %104 : vector<16xf32> to vector<16x1xf32>
    %cst_25 = arith.constant 3.200000e+01 : f32
    %106 = vector.broadcast %cst_25 : f32 to vector<16x1xf32>
    %107 = arith.divf %105, %106 : vector<16x1xf32>
    %108 = vector.broadcast %98 : vector<16x1xf32> to vector<16x32xf32>
    %109 = arith.subf %94, %108 : vector<16x32xf32>
    %cst_26 = arith.constant 9.99999974E-6 : f32
    %110 = vector.broadcast %cst_26 : f32 to vector<16x1xf32>
    %111 = arith.addf %107, %110 : vector<16x1xf32>
    %112 = math.rsqrt %111 : vector<16x1xf32>
    %113 = vector.broadcast %112 : vector<16x1xf32> to vector<16x32xf32>
    %114 = arith.mulf %109, %113 : vector<16x32xf32>
    %c0_27 = arith.constant 0 : index
    %c0_28 = arith.constant 0 : index
    %115 = vector.load %arg9[%c0_27, %c0_28] : memref<1x32xf32, #tpu.memory_space<vmem>>, vector<1x32xf32>
    %116 = vector.broadcast %115 : vector<1x32xf32> to vector<16x32xf32>
    %117 = arith.mulf %114, %116 : vector<16x32xf32>
    %c0_29 = arith.constant 0 : index
    %c0_30 = arith.constant 0 : index
    %118 = vector.load %arg10[%c0_29, %c0_30] : memref<1x32xf32, #tpu.memory_space<vmem>>, vector<1x32xf32>
    %119 = vector.broadcast %118 : vector<1x32xf32> to vector<16x32xf32>
    %120 = arith.addf %117, %119 : vector<16x32xf32>
    %121 = arith.truncf %120 : vector<16x32xf32> to vector<16x32xbf16>
    %c0_31 = arith.constant 0 : index
    %c0_32 = arith.constant 0 : index
    %122 = vector.load %arg5[%c0_31, %c0_32] : memref<32x64xbf16, #tpu.memory_space<vmem>>, vector<32x64xbf16>
    %cst_33 = arith.constant dense<0.000000e+00> : vector<16x64xf32>
    %123 = tpu.matmul %121, %122, %cst_33 {dimension_numbers = #tpu.dot_dimension_numbers<[1], [0], [0], [1], [0, 0, 1, 1], [], []>} : vector<16x32xbf16>, vector<32x64xbf16>, vector<16x64xf32> -> vector<16x64xf32>
    %c0_34 = arith.constant 0 : index
    %c0_35 = arith.constant 0 : index
    %124 = vector.load %arg6[%c0_34, %c0_35] : memref<1x64xf32, #tpu.memory_space<vmem>>, vector<1x64xf32>
    %125 = vector.broadcast %124 : vector<1x64xf32> to vector<16x64xf32>
    %126 = arith.addf %123, %125 : vector<16x64xf32>
    %cst_36 = arith.constant 0.000000e+00 : f32
    %127 = vector.broadcast %cst_36 : f32 to vector<16x64xf32>
    %128 = arith.maximumf %126, %127 : vector<16x64xf32>
    %129 = arith.truncf %128 : vector<16x64xf32> to vector<16x64xbf16>
    %c0_37 = arith.constant 0 : index
    %c0_38 = arith.constant 0 : index
    %130 = vector.load %arg7[%c0_37, %c0_38] : memref<64x32xbf16, #tpu.memory_space<vmem>>, vector<64x32xbf16>
    %cst_39 = arith.constant dense<0.000000e+00> : vector<16x32xf32>
    %131 = tpu.matmul %129, %130, %cst_39 {dimension_numbers = #tpu.dot_dimension_numbers<[1], [0], [0], [1], [0, 0, 1, 1], [], []>} : vector<16x64xbf16>, vector<64x32xbf16>, vector<16x32xf32> -> vector<16x32xf32>
    %c0_40 = arith.constant 0 : index
    %c0_41 = arith.constant 0 : index
    %132 = vector.load %arg8[%c0_40, %c0_41] : memref<1x32xf32, #tpu.memory_space<vmem>>, vector<1x32xf32>
    %133 = vector.broadcast %132 : vector<1x32xf32> to vector<16x32xf32>
    %134 = arith.addf %131, %133 : vector<16x32xf32>
    %135 = arith.addf %120, %134 : vector<16x32xf32>
    %cst_42 = arith.constant dense<0.000000e+00> : vector<16xf32>
    %136 = vector.multi_reduction <add>, %135, %cst_42 [1] : vector<16x32xf32> to vector<16xf32>
    %137 = vector.shape_cast %136 : vector<16xf32> to vector<16x1xf32>
    %cst_43 = arith.constant 3.200000e+01 : f32
    %138 = vector.broadcast %cst_43 : f32 to vector<16x1xf32>
    %139 = arith.divf %137, %138 : vector<16x1xf32>
    %140 = vector.broadcast %139 : vector<16x1xf32> to vector<16x32xf32>
    %141 = arith.subf %135, %140 : vector<16x32xf32>
    %142 = vector.broadcast %139 : vector<16x1xf32> to vector<16x32xf32>
    %143 = arith.subf %135, %142 : vector<16x32xf32>
    %144 = arith.mulf %141, %143 : vector<16x32xf32>
    %cst_44 = arith.constant dense<0.000000e+00> : vector<16xf32>
    %145 = vector.multi_reduction <add>, %144, %cst_44 [1] : vector<16x32xf32> to vector<16xf32>
    %146 = vector.shape_cast %145 : vector<16xf32> to vector<16x1xf32>
    %cst_45 = arith.constant 3.200000e+01 : f32
    %147 = vector.broadcast %cst_45 : f32 to vector<16x1xf32>
    %148 = arith.divf %146, %147 : vector<16x1xf32>
    %149 = vector.broadcast %139 : vector<16x1xf32> to vector<16x32xf32>
    %150 = arith.subf %135, %149 : vector<16x32xf32>
    %cst_46 = arith.constant 9.99999974E-6 : f32
    %151 = vector.broadcast %cst_46 : f32 to vector<16x1xf32>
    %152 = arith.addf %148, %151 : vector<16x1xf32>
    %153 = math.rsqrt %152 : vector<16x1xf32>
    %154 = vector.broadcast %153 : vector<16x1xf32> to vector<16x32xf32>
    %155 = arith.mulf %150, %154 : vector<16x32xf32>
    %c0_47 = arith.constant 0 : index
    %c0_48 = arith.constant 0 : index
    %156 = vector.load %arg11[%c0_47, %c0_48] : memref<1x32xf32, #tpu.memory_space<vmem>>, vector<1x32xf32>
    %157 = vector.broadcast %156 : vector<1x32xf32> to vector<16x32xf32>
    %158 = arith.mulf %155, %157 : vector<16x32xf32>
    %c0_49 = arith.constant 0 : index
    %c0_50 = arith.constant 0 : index
    %159 = vector.load %arg12[%c0_49, %c0_50] : memref<1x32xf32, #tpu.memory_space<vmem>>, vector<1x32xf32>
    %160 = vector.broadcast %159 : vector<1x32xf32> to vector<16x32xf32>
    %161 = arith.addf %158, %160 : vector<16x32xf32>
    %c0_51 = arith.constant 0 : index
    %c0_52 = arith.constant 0 : index
    %c0_53 = arith.constant 0 : index
    %162 = vector.load %arg13[%c0_51, %c0_52, %c0_53] : memref<1x16x32xf32, #tpu.memory_space<vmem>>, vector<1x16x32xf32>
    %163 = vector.shape_cast %162 : vector<1x16x32xf32> to vector<16x32xf32>
    %164 = vector.shape_cast %161 : vector<16x32xf32> to vector<1x16x32xf32>
    tpu.vector_store %arg13[%c0_51, %c0_52, %c0_53], %164 {strides = array<i32>} : memref<1x16x32xf32, #tpu.memory_space<vmem>>, vector<1x16x32xf32>,
    return
  }
  func.func @transform_0(%arg0: i32) -> (i32, i32, i32) {
    %c0_i32 = arith.constant 0 : i32
    %c0_i32_0 = arith.constant 0 : i32
    %c0_i32_1 = arith.constant 0 : i32
    return %arg0, %c0_i32, %c0_i32_0 : i32, i32, i32
  }
  func.func @transform_1(%arg0: i32) -> (i32, i32) {
    %c0_i32 = arith.constant 0 : i32
    %c0_i32_0 = arith.constant 0 : i32
    %c0_i32_1 = arith.constant 0 : i32
    return %c0_i32, %c0_i32_0 : i32, i32
  }
  func.func @transform_2(%arg0: i32) -> (i32, i32) {
    %c0_i32 = arith.constant 0 : i32
    %c0_i32_0 = arith.constant 0 : i32
    %c0_i32_1 = arith.constant 0 : i32
    return %c0_i32, %c0_i32_0 : i32, i32
  }
  func.func @transform_3(%arg0: i32) -> (i32, i32, i32) {
    %c0_i32 = arith.constant 0 : i32
    %c0_i32_0 = arith.constant 0 : i32
    %c0_i32_1 = arith.constant 0 : i32
    %c0_i32_2 = arith.constant 0 : i32
    return %c0_i32, %c0_i32_0, %c0_i32_1 : i32, i32, i32
  }
  func.func @transform_4(%arg0: i32) -> (i32, i32) {
    %c0_i32 = arith.constant 0 : i32
    %c0_i32_0 = arith.constant 0 : i32
    %c0_i32_1 = arith.constant 0 : i32
    return %c0_i32, %c0_i32_0 : i32, i32
  }
  func.func @transform_5(%arg0: i32) -> (i32, i32) {
    %c0_i32 = arith.constant 0 : i32
    %c0_i32_0 = arith.constant 0 : i32
    %c0_i32_1 = arith.constant 0 : i32
    return %c0_i32, %c0_i32_0 : i32, i32
  }
  func.func @transform_6(%arg0: i32) -> (i32, i32) {
    %c0_i32 = arith.constant 0 : i32
    %c0_i32_0 = arith.constant 0 : i32
    %c0_i32_1 = arith.constant 0 : i32
    return %c0_i32, %c0_i32_0 : i32, i32
  }
  func.func @transform_7(%arg0: i32) -> (i32, i32) {
    %c0_i32 = arith.constant 0 : i32
    %c0_i32_0 = arith.constant 0 : i32
    %c0_i32_1 = arith.constant 0 : i32
    return %c0_i32, %c0_i32_0 : i32, i32
  }
  func.func @transform_8(%arg0: i32) -> (i32, i32) {
    %c0_i32 = arith.constant 0 : i32
    %c0_i32_0 = arith.constant 0 : i32
    %c0_i32_1 = arith.constant 0 : i32
    return %c0_i32, %c0_i32_0 : i32, i32
  }
  func.func @transform_9(%arg0: i32) -> (i32, i32) {
    %c0_i32 = arith.constant 0 : i32
    %c0_i32_0 = arith.constant 0 : i32
    %c0_i32_1 = arith.constant 0 : i32
    return %c0_i32, %c0_i32_0 : i32, i32
  }
  func.func @transform_10(%arg0: i32) -> (i32, i32) {
    %c0_i32 = arith.constant 0 : i32
    %c0_i32_0 = arith.constant 0 : i32
    %c0_i32_1 = arith.constant 0 : i32
    return %c0_i32, %c0_i32_0 : i32, i32
  }
  func.func @transform_11(%arg0: i32) -> (i32, i32) {
    %c0_i32 = arith.constant 0 : i32
    %c0_i32_0 = arith.constant 0 : i32
    %c0_i32_1 = arith.constant 0 : i32
    return %c0_i32, %c0_i32_0 : i32, i32
  }
  func.func @transform_12(%arg0: i32) -> (i32, i32, i32) {
    %c0_i32 = arith.constant 0 : i32
    %c0_i32_0 = arith.constant 0 : i32
    %c0_i32_1 = arith.constant 0 : i32
    return %arg0, %c0_i32, %c0_i32_0 : i32, i32, i32
  }
}

</mosaic_0001>

<bundles_post_ra>
// kernel: tpu_custom_call.1
= control target key start
LH: loop header
LB: loop body
LE: loop exit
PB: predicated region body
PF: predicated region fallthrough
CT: control target
= control target key end

     0   :  { %17 = vsyncpa [#allocation4], 0  ;;  %s2594_s0 = inlined_call_operand.vmem [shape: f32[2,16,32], index: 0, kind: input, shape index: {}]   ;;  %s2595_s1 = inlined_call_operand.vmem [shape: bf16[32,96], index: 1, kind: input, shape index: {}]   ;;  %s2596_s2 = inlined_call_operand.vmem [shape: f32[1,96], index: 2, kind: input, shape index: {}]   ;;  %s2597_s3 = inlined_call_operand.hbm [shape: bf16[4,8,96], index: 3, kind: input, shape index: {}]   ;;  %s2598_s4 = inlined_call_operand.hbm [shape: bf16[32,64], index: 4, kind: input, shape index: {}]   ;;  %s2599_s5 = inlined_call_operand.vmem [shape: f32[1,64], index: 5, kind: input, shape index: {}]   ;;  %s2600_s6 = inlined_call_operand.vmem [shape: bf16[64,32], index: 6, kind: input, shape index: {}]   ;;  %s2601_s7 = inlined_call_operand.vmem [shape: f32[1,32], index: 7, kind: input, shape index: {}]   ;;  %s2602_s8 = inlined_call_operand.vmem [shape: f32[1,32], index: 8, kind: input, shape index: {}]   ;;  %s2603_s9 = inlined_call_operand.vmem [shape: f32[1,32], index: 9, kind: input, shape index: {}]   ;;  %s2604_s10 = inlined_call_operand.vmem [shape: f32[1,32], index: 10, kind: input, shape index: {}]   ;;  %s2605_s11 = inlined_call_operand.vmem [shape: f32[1,32], index: 11, kind: input, shape index: {}]   ;;  %s2606_s12 = inlined_call_operand.hbm [shape: f32[2,16,32], index: 12, kind: output, shape index: {}]  }
   0x1   :  { %18 = vsyncpa [#allocation7], 0 }
   0x2   :  { %19 = vsyncpa [#allocation5], 0 }
   0x3   :  { %21 = vsyncpa [#allocation5 + $0x1], 0  ;;  %s2076_s21 = smov 0   ;;  %s2078_s22 = smov 0  }
   0x4   :  { %s2080_s23 = smov 0   ;;  %s2082_s24 = smov 0  }
   0x5 LB: > { %2624 = sst [smem:[#allocation12_spill]] %s1975_s23  ;;  %s2097_s25 = sadd.s32 4294967295, %s1979_s24   ;;  %s1979_s24 = sphi %s2082_s24, %s2637_s24   ;;  %s1975_s23 = sphi %s2080_s23, %s2639_s23   ;;  %s1971_s22 = sphi %s2078_s22, %s2641_s22   ;;  %s1967_s21 = sphi %s2076_s21, %s2640_s21  }
   0x6   : > { %s1622_s26 = sadd.s32 4294967294, %s1979_s24   ;;  %s2101_s27 = sadd.s32 1, %s1979_s24  }
   0x7   : > { %2625 = sst [smem:[#allocation13_spill]] %s2101_s27  ;;  %s291_s28 = sadd.s32 1, %s1975_s23 }
   0x8   : > { %s288_s29 = ssub.s32 %s1979_s24, %s2101_s27  ;;  %p301_p0 = scmp.ne.s32.totalorder %s1975_s23, %s1971_s22 }
   0x9   : > { %p289_p1 = scmp.eq.s32.totalorder %s288_s29, 0  ;;  %p302_p2 = scmp.eq.s32.totalorder %s2097_s25, 1 }
   0xa   : > { %p307_p3 = scmp.ne.s32.totalorder %s1971_s22, %s1967_s21  ;;  %p308_p4 = scmp.eq.s32.totalorder %s1622_s26, 1 }
   0xb   : > { %s2112_s30 = scalar_select %p289_p1, %s1975_s23, %s291_s28  }
   0xc   : > { %p2114_p5 = por %p302_p2, %p301_p0  ;;  %p2118_p6 = por %p308_p4, %p307_p3 }
   0xd   : > { %2626 = sst [smem:[#allocation14_spill]] %s2112_s30  ;;  %p1623_p7 = scmp.ge.s32.totalorder %s1979_s24, 1 }
   0xe   : > { %p315_p8 = scmp.lt.s32.totalorder %s1979_s24, 3  ;;  %p1716_p9 = scmp.eq.s32.totalorder %s2097_s25, 0 }
   0xf   : > { %s332_s18 = sshll.u32 %s2597_s3, 4  ;;  %s1981_s19 = smov [#allocation3]   ;;  %s333_s18 = int_to_ptr.hbm [resolvable:$true] %s332_s18 }
  0x10   : > { %p2125_p10 = pnand %p1623_p7, %p315_p8  ;;  %s334_s20 = sshll.u32 %s1981_s19, 4  ;;  %s335_s20 = int_to_ptr.vmem [resolvable:$true] %s334_s20 }
  0x11   : > { %s346_s29 = sshll.u32 %s2598_s4, 4  ;;  %s1982_s30 = smov 64   ;;  %s347_s29 = int_to_ptr.hbm [resolvable:$true] %s346_s29 }
  0x12   : > { %p1705_p11 = pneg %p2125_p10  ;;  %s1983_s23 = smov 4  }
  0x13   : > { %s1984_s27 = smov [#allocation6]   ;;  %393 = sbr.rel (%p2125_p10) target bundleno = 2134 (0x856), region = 68 }
  0x14   : > { %p1706_p12 = pnand %p1716_p9, %p1705_p11  ;;  %s348_s16 = sshll.u32 %s1984_s27, 4  ;;  %s349_s16 = int_to_ptr.vmem [resolvable:$true] %s348_s16 }
  0x16   : > { %1708 = dma.hbm_to_vmem [thread:$0]  (!%p1706_p12), %s333_s18, 256, %s335_s20, [#allocation4], %s1982_s30, %s1982_s30, %s1983_s23  }
  0x17   : > { %1711 = dma.hbm_to_vmem [thread:$0]  (!%p1706_p12), %s347_s29, 256, %s349_s16, [#allocation7], %s1982_s30, %s1982_s30, %s1983_s23  }
  0x18   : > { %1954 = dma.done.wait (%p1716_p9), [#allocation4], 256  }
  0x19   : > { %1956 = vsyncadd (%p1716_p9), [#allocation4], 4294967040 }
  0x1a   : > { %1958 = dma.done.wait (%p1716_p9), [#allocation7], 256  }
  0x1b   : > { %1960 = vsyncadd (%p1716_p9), [#allocation7], 4294967040  ;;  %p441_p13 = scmp.lt.s32.totalorder %s2097_s25, 1  ;;  %v1687_v0 = vld [vmem:[%s2595_s1 + $0x8] sm:$0xff]  ;;  %v1686_v1 = vld [vmem:[%s2595_s1] sm:$0xff]  ;;  %vm470_vm0 = vcmask 261120  }
  0x1c   : > { %480 = vmatpush.bf16.msra.mxu0 %v1687_v0  ;;  %v516_v5 = vld [vmem:[#allocation3] sm:$0xf]  ;;  %vm529_vm1 = vcmask 1043456   ;;  %v1798_v8 = vld [vmem:[%s2596_s2] ss:$0 sm:$0xff]  ;;  %s1985_s16 = smov 104  }
  0x1d   : > { %s442_s27 = scalar_select %p441_p13, %s2097_s25, 1  ;;  %v531_v6 = vsel %vm529_vm1, %v516_v5, 0  ;;  %vm525_vm2 = vcmask 64512   ;;  %v519_v18 = vld [vmem:[#allocation3 + $0xc] sm:$0xf]  ;;  %vm810_vm3 = vcmask 1040384  }
  0x1e   : > { %540 = vmatpush.bf16.msra.mxu1 %v531_v6  ;;  %s1988_s30 = smov 96   ;;  %v517_v19 = vld [vmem:[#allocation3 + $0x4] sm:$0xf]  ;;  %v606_v20 = vsel %vm529_vm1, %v519_v18, 0  ;;  %v518_v22 = vld [vmem:[#allocation3 + $0x8] sm:$0xf] }
  0x1f   : > { %s1685_s23 = sshll.u32 %s442_s27, 4  ;;  %s1986_s27 = smov 120   ;;  %v556_v21 = vsel %vm529_vm1, %v517_v19, 0  ;;  %v581_v23 = vsel %vm529_vm1, %v518_v22, 0  ;;  %vm815_vm4 = vcmask 1041408   ;;  %vm820_vm5 = vcmask 1042432  }
  0x20   : > { %s2154_s17 = scalar_lea.vmem %s2594_s0, %s1685_s23  ;;  %481 = vmatpush.bf16.msra.mxu0 %v1686_v1  ;;  %s2610_s23 = smov 112   ;;  %565 = vmatpush.bf16.msra.mxu2 %v556_v21  ;;  %vm829_vm6 = vcmask 1044480   ;;  %vm834_vm7 = vcmask 1045504   ;;  %vm839_vm8 = vcmask 1046528   ;;  %vm1068_vm9 = vcmask 130048  }
  0x21   : > { %v447_v2 = vld [vmem:[%s2154_s17] sm:$0xff]  ;;  %v448_v3 = vld [vmem:[%s2154_s17 + $0x8] sm:$0xff]  ;;  %590 = vmatpush.bf16.msra.mxu3 %v581_v23  ;;  %s2618_s15 = smov 3   ;;  %s1990_s18 = smov 1   ;;  %vm1275_vm10 = vcmask 130112   ;;  %vm1286_vm11 = vcmask 195712  }
  0x22   : > { %v449_v4 = vpack.c.bf16 %v448_v3, %v447_v2  ;;  %615 = vmatpush.bf16.msrb.mxu1 %v606_v20  ;;  %s2614_s19 = smov 6   ;;  %s1992_s20 = smov 2   ;;  %vm1297_vm12 = vcmask 261312  }
  0x23   : > { %s2612_s26 = smov 9   ;;  %s1994_s28 = smov 4  }
  0x24   : > { %1641 = vmatmul.msk.bf16.vlgmr.msra.gmra.mxu0 %vm470_vm0, %v449_v4  ;;  %s1995_s29 = smov 5  }
  0xa1   : > { %v483_v7 = vpop.f32.mrf.mxu0 }
  0xa2   : > { %v484_v9 = vadd.f32 %v1798_v8, %v483_v7 }
  0xa4   : > { %v508_v11 = vpack.c.bf16 %v484_v9, %v484_v9 }
  0xa6   : > { %v522_v15 = vunpack.c.l.b16 %v508_v11 }
  0xa9   : > { %v485_v10 = vpop.f32.mrf.mxu0 }
  0xaa   : > { %v486_v12 = vadd.f32 %v1798_v8, %v485_v10 }
  0xac   : > { %v509_v13 = vpack.c.bf16 %v486_v12, %v486_v12  ;;  %v1793_v14 = vpack.i.bf16 %v486_v12, %v484_v9 }
  0xae   : > { %v523_v16 = vunpack.c.l.b16 %v509_v13  ;;  %1794 = vrot.lane.b32.xlu1 %v1793_v14, %s1985_s16  ;;  %1784 = vrot.lane.b32.xlu0 %v1793_v14, %s1986_s27  ;;  %s2616_s16 = smov 12   ;;  %s1997_s27 = smov 7  }
  0xb0   : > { %v2169_v17 = vpack.c.b16 %v523_v16, %v522_v15 }
  0xb2   : > { %1642 = vmatmul.msk.bf16.vlgmr.msra.gmra.mxu1 %vm525_vm2, %v2169_v17 }
  0xb6   : > { %1789 = vrot.lane.b32.xlu0 %v1793_v14, %s2610_s23  ;;  %s2622_s23 = smov 15  }
  0xbe   : > { %880 = vrot.lane.b32.xlu0 %v2169_v17, %s1988_s30 }
 0x120   : > { %v1795_v24 = vpop.permute.xlu1 %1794  ;;  %v1785_v25 = vpop.permute.xlu0 %1784 }
 0x121   : > { %v1797_v26 = vunpack.i.h.bf16 %v1795_v24  ;;  %v1796_v27 = vunpack.i.l.bf16 %v1795_v24  ;;  %v1787_v28 = vunpack.i.h.bf16 %v1785_v25  ;;  %v1786_v29 = vunpack.i.l.bf16 %v1785_v25 }
 0x123   : > { %v515_v30 = vpack.c.bf16 %v1797_v26, %v1797_v26  ;;  %v514_v31 = vpack.c.bf16 %v1796_v27, %v1796_v27  ;;  %v511_v32 = vpack.c.bf16 %v1787_v28, %v1787_v28  ;;  %v510_v33 = vpack.c.bf16 %v1786_v29, %v1786_v29 }
 0x125   : > { %v600_v34 = vunpack.c.l.b16 %v515_v30  ;;  %v599_v35 = vunpack.c.l.b16 %v514_v31  ;;  %v550_v36 = vunpack.c.l.b16 %v511_v32  ;;  %v549_v37 = vunpack.c.l.b16 %v510_v33 }
 0x127   : > { %v2179_v38 = vpack.c.b16 %v600_v34, %v599_v35  ;;  %v2181_v39 = vpack.c.b16 %v550_v36, %v549_v37 }
 0x128   : > { %v1790_v40 = vpop.permute.xlu0 %1789 }
 0x129   : > { %v1792_v41 = vunpack.i.h.bf16 %v1790_v40  ;;  %v1791_v42 = vunpack.i.l.bf16 %v1790_v40  ;;  %907 = vrot.lane.b32.xlu1 %v2181_v39, %s1988_s30  ;;  %1643 = vmatmul.msk.bf16.vlgmr.msra.gmra.mxu2 %vm525_vm2, %v2181_v39 }
 0x12a   : > { %1645 = vmatmul.msk.bf16.vlgmr.msrb.gmra.mxu1 %vm525_vm2, %v2179_v38 }
 0x12b   : > { %v513_v43 = vpack.c.bf16 %v1792_v41, %v1792_v41  ;;  %v512_v44 = vpack.c.bf16 %v1791_v42, %v1791_v42 }
 0x12d   : > { %v575_v45 = vunpack.c.l.b16 %v513_v43  ;;  %v574_v46 = vunpack.c.l.b16 %v512_v44 }
 0x12f   : > { %v2189_v47 = vpack.c.b16 %v575_v45, %v574_v46  ;;  %v2191_v48 = vpop.f32.mrf.mxu1 }
 0x130   : > { %v881_v49 = vpop.permute.xlu0 %880  ;;  %650 = vrot.lane.b32.xlu0 %v2191_v48, %s2618_s15  ;;  %s2620_s15 = smov 13  }
 0x131   : > { %934 = vrot.lane.b32.xlu2 %v2189_v47, %s1988_s30  ;;  %1644 = vmatmul.msk.bf16.vlgmr.msra.gmra.mxu3 %vm525_vm2, %v2189_v47  ;;  %v891_v50 = vsel %vm525_vm2, %v881_v49, 0 }
 0x132   : > { %626 = vrot.lane.b32.xlu1 %v2191_v48, %s1990_s18  ;;  %900 = vmatpush.bf16.xpose.msrb.mxu2 %v891_v50 }
 0x137   : > { %v2210_v51 = vpop.f32.mrf.mxu1 }
 0x138   : > { %686 = vrot.lane.b32.xlu0 %v2191_v48, %s2614_s19  ;;  %s2001_s19 = smov 14  }
 0x139   : > { %961 = vrot.lane.b32.xlu2 %v2179_v38, %s1988_s30  ;;  %1646 = vmatmul.msk.bf16.vlgmr.msrb.gmra.mxu2 %vm525_vm2, %v2169_v17  ;;  %s1998_s30 = smov 11  }
 0x13a   : > { %638 = vrot.lane.b32.xlu1 %v2191_v48, %s1992_s20 }
 0x140   : > { %726 = vrot.lane.b32.xlu0 %v2210_v51, %s2612_s26  ;;  %s2000_s26 = smov 8  }
 0x141   : > { %662 = vrot.lane.b32.xlu2 %v2191_v48, %s1994_s28 }
 0x142   : > { %674 = vrot.lane.b32.xlu1 %v2191_v48, %s1995_s29 }
 0x148   : > { %762 = vrot.lane.b32.xlu0 %v2210_v51, %s2616_s16  ;;  %s2002_s16 = smov 10  }
 0x149   : > { %698 = vrot.lane.b32.xlu2 %v2191_v48, %s1997_s27 }
 0x14a   : > { %750 = vrot.lane.b32.xlu1 %v2210_v51, %s1998_s30 }
 0x150   : > { %798 = vrot.lane.b32.xlu0 %v2210_v51, %s2622_s23  ;;  %s2631_s23 = smov 6  }
 0x151   : > { %714 = vrot.lane.b32.xlu2 %v2210_v51, %s2000_s26 }
 0x152   : > { %786 = vrot.lane.b32.xlu1 %v2210_v51, %s2001_s19 }
 0x159   : > { %738 = vrot.lane.b32.xlu2 %v2210_v51, %s2002_s16 }
 0x161   : > { %774 = vrot.lane.b32.xlu2 %v2210_v51, %s2620_s15  ;;  %s2630_s15 = smov 3  }
 0x18b   : > { %v935_v52 = vpop.permute.xlu2 %934 }
 0x18c   : > { %v945_v53 = vsel %vm525_vm2, %v935_v52, 0 }
 0x18d   : > { %954 = vmatpush.bf16.xpose.msrb.mxu0 %v945_v53 }
 0x193   : > { %v962_v54 = vpop.permute.xlu2 %961 }
 0x194   : > { %v972_v55 = vsel %vm525_vm2, %v962_v54, 0  ;;  %1648 = vmatmul.msk.bf16.vlgmr.msrb.gmra.mxu0 %vm525_vm2, %v2189_v47 }
 0x195   : > { %981 = vmatpush.bf16.xpose.msra.mxu1 %v972_v55 }
 0x19b   : > { %v908_v56 = vpop.permute.xlu1 %907  ;;  %v2238_v57 = vpop.permute.xlu2 %662 }
 0x19c   : > { %1649 = vmatmul.msk.bf16.vlgmr.msra.gmra.mxu1 %vm525_vm2, %v2179_v38  ;;  %v918_v58 = vsel %vm525_vm2, %v908_v56, 0 }
 0x19d   : > { %927 = vmatpush.bf16.xpose.msrb.mxu3 %v918_v58 }
 0x1a2   : > { %v651_v59 = vpop.permute.xlu0 %650 }
 0x1a3   : > { %v699_v60 = vpop.permute.xlu2 %698 }
 0x1a4   : > { %v627_v61 = vpop.permute.xlu1 %626  ;;  %1647 = vmatmul.msk.bf16.vlgmr.msrb.gmra.mxu3 %vm525_vm2, %v2181_v39 }
 0x1a5   : > { %v811_v1 = vsel %vm810_vm3, %v2191_v48, %v627_v61 }
 0x1a7   : > { %v2245_v62 = vpop.f32.mrf.mxu1 }
 0x1a8   : > { %668 = vrot.lane.b32.xlu2 %v2245_v62, %s1994_s28  ;;  %644 = vrot.lane.b32.xlu0 %v2245_v62, %s1992_s20 }
 0x1a9   : > { %632 = vrot.lane.b32.xlu1 %v2245_v62, %s1990_s18 }
 0x1aa   : > { %v687_v63 = vpop.permute.xlu0 %686 }
 0x1ab   : > { %v715_v0 = vpop.permute.xlu2 %714 }
 0x1ac   : > { %v639_v2 = vpop.permute.xlu1 %638  ;;  %v2269_v13 = vpop.f32.mrf.mxu2 }
 0x1ad   : > { %v816_v3 = vsel %vm815_vm4, %v811_v1, %v639_v2 }
 0x1ae   : > { %v821_v4 = vsel %vm820_vm5, %v816_v3, %v651_v59 }
 0x1af   : > { %v825_v5 = vsel %vm529_vm1, %v821_v4, %v2238_v57  ;;  %v2301_v22 = vpop.f32.mrf.mxu1 }
 0x1b0   : > { %704 = vrot.lane.b32.xlu2 %v2245_v62, %s1997_s27  ;;  %680 = vrot.lane.b32.xlu0 %v2245_v62, %s1995_s29 }
 0x1b1   : > { %656 = vrot.lane.b32.xlu1 %v2245_v62, %s2630_s15 }
 0x1b2   : > { %v727_v6 = vpop.permute.xlu0 %726 }
 0x1b3   : > { %v844_v7 = vsel %vm810_vm3, %v715_v0, %v727_v6  ;;  %v739_v8 = vpop.permute.xlu2 %738 }
 0x1b4   : > { %v675_v9 = vpop.permute.xlu1 %674  ;;  %v848_v10 = vsel %vm815_vm4, %v844_v7, %v739_v8  ;;  %v2293_v21 = vpop.f32.mrf.mxu3 }
 0x1b5   : > { %v830_v11 = vsel %vm829_vm6, %v825_v5, %v675_v9  ;;  %v569_v23 = vpop.f32.mrf.mxu2 }
 0x1b6   : > { %v835_v12 = vsel %vm834_vm7, %v830_v11, %v687_v63 }
 0x1b7   : > { %v2272_v14 = vsel %vm839_vm8, %v835_v12, %v699_v60 }
 0x1b8   : > { %664 = vrot.lane.b32.xlu2 %v2269_v13, %s1994_s28  ;;  %652 = vrot.lane.b32.xlu0 %v2269_v13, %s2630_s15 }
 0x1b9   : > { %692 = vrot.lane.b32.xlu1 %v2245_v62, %s2631_s23 }
 0x1ba   : > { %v763_v15 = vpop.permute.xlu0 %762 }
 0x1bb   : > { %v2281_v16 = vsel %vm529_vm1, %v715_v0, %v763_v15  ;;  %v2336_v24 = vpop.permute.xlu2 %774 }
 0x1bc   : > { %v751_v18 = vpop.permute.xlu1 %750  ;;  %v594_v26 = vpop.f32.mrf.mxu3 }
 0x1bd   : > { %v852_v19 = vsel %vm820_vm5, %v848_v10, %v751_v18 }
 0x1be   : > { %v2285_v20 = vsel %vm529_vm1, %v852_v19, %v763_v15 }
 0x1c0   : > { %700 = vrot.lane.b32.xlu2 %v2269_v13, %s1997_s27  ;;  %688 = vrot.lane.b32.xlu0 %v2269_v13, %s2631_s23 }
 0x1c1   : > { %628 = vrot.lane.b32.xlu1 %v2269_v13, %s1990_s18 }
 0x1c2   : > { %v2347_v28 = vpop.permute.xlu0 %798 }
 0x1c4   : > { %v2349_v30 = vpop.permute.xlu1 %786 }
 0x1c8   : > { %642 = vrot.lane.b32.xlu2 %v2293_v21, %s1992_s20  ;;  %678 = vrot.lane.b32.xlu0 %v2293_v21, %s1995_s29 }
 0x1c9   : > { %640 = vrot.lane.b32.xlu1 %v2269_v13, %s1992_s20  ;;  %s2004_s20 = smov 48  }
 0x1d0   : > { %666 = vrot.lane.b32.xlu2 %v2293_v21, %s1994_s28  ;;  %720 = vrot.lane.b32.xlu0 %v2301_v22, %s2000_s26  ;;  %s2632_s28 = smov 15  }
 0x1d1   : > { %676 = vrot.lane.b32.xlu1 %v2269_v13, %s1995_s29  ;;  %s2634_s29 = smov 9  }
 0x1d8   : > { %702 = vrot.lane.b32.xlu2 %v2293_v21, %s1997_s27  ;;  %756 = vrot.lane.b32.xlu0 %v2301_v22, %s1998_s30  ;;  %s2007_s27 = smov 16  }
 0x1d9   : > { %630 = vrot.lane.b32.xlu1 %v2293_v21, %s1990_s18  ;;  %s2633_s18 = smov 13  }
 0x1e0   : > { %1032 = vrot.lane.b32.xlu2 %v2269_v13, %s2004_s20  ;;  %792 = vrot.lane.b32.xlu0 %v2301_v22, %s2001_s19 }
 0x1e1   : > { %654 = vrot.lane.b32.xlu1 %v2293_v21, %s2630_s15  ;;  %s2635_s15 = smov 12  }
 0x1e8   : > { %744 = vrot.lane.b32.xlu2 %v2301_v22, %s2002_s16  ;;  %804 = vrot.lane.b32.xlu0 %v2301_v22, %s2632_s28 }
 0x1e9   : > { %690 = vrot.lane.b32.xlu1 %v2293_v21, %s2631_s23  ;;  %s2005_s23 = smov 80  }
 0x1f0   : > { %780 = vrot.lane.b32.xlu2 %v2301_v22, %s2633_s18  ;;  %728 = vrot.lane.b32.xlu0 %v569_v23, %s2634_s29 }
 0x1f1   : > { %732 = vrot.lane.b32.xlu1 %v2301_v22, %s2634_s29 }
 0x1f8   : > { %716 = vrot.lane.b32.xlu2 %v569_v23, %s2000_s26  ;;  %764 = vrot.lane.b32.xlu0 %v569_v23, %s2635_s15 }
 0x1f9   : > { %768 = vrot.lane.b32.xlu1 %v2301_v22, %s2635_s15 }
 0x200   : > { %740 = vrot.lane.b32.xlu2 %v569_v23, %s2002_s16  ;;  %800 = vrot.lane.b32.xlu0 %v569_v23, %s2632_s28 }
 0x201   : > { %752 = vrot.lane.b32.xlu1 %v569_v23, %s1998_s30 }
 0x202   : > { %v669_v25 = vpop.permute.xlu2 %668 }
 0x203   : > { %v875_v37 = vsel %vm529_vm1, %v2245_v62, %v669_v25 }
 0x208   : > { %776 = vrot.lane.b32.xlu2 %v569_v23, %s2633_s18  ;;  %730 = vrot.lane.b32.xlu0 %v594_v26, %s2634_s29 }
 0x209   : > { %788 = vrot.lane.b32.xlu1 %v569_v23, %s2001_s19 }
 0x20a   : > { %v705_v27 = vpop.permute.xlu2 %704 }
 0x210   : > { %718 = vrot.lane.b32.xlu2 %v594_v26, %s2000_s26  ;;  %754 = vrot.lane.b32.xlu0 %v594_v26, %s1998_s30  ;;  %s2008_s30 = smov 24  }
 0x211   : > { %766 = vrot.lane.b32.xlu1 %v594_v26, %s2635_s15  ;;  %s438_s15 = sand.u32 1, %s1971_s22  }
 0x212   : > { %v665_v29 = vpop.permute.xlu2 %664 }
 0x213   : > { %v873_v49 = vsel %vm529_vm1, %v2269_v13, %v665_v29 }
 0x218   : > { %742 = vrot.lane.b32.xlu2 %v594_v26, %s2002_s16  ;;  %790 = vrot.lane.b32.xlu0 %v594_v26, %s2001_s19  ;;  %s2636_s19 = smov 112   ;;  %s2006_s16 = smov 64  }
 0x219   : > { %802 = vrot.lane.b32.xlu1 %v594_v26, %s2632_s28  ;;  %s1929_s28 = scalar_lea.hbm %s2606_s12, 32 }
 0x21a   : > { %v701_v31 = vpop.permute.xlu2 %700  ;;  %v645_v32 = vpop.permute.xlu0 %644 }
 0x21b   : > { %v633_v33 = vpop.permute.xlu1 %632 }
 0x21c   : > { %v814_v40 = vsel %vm810_vm3, %v2245_v62, %v633_v33 }
 0x21d   : > { %v819_v44 = vsel %vm815_vm4, %v814_v40, %v645_v32 }
 0x220   : > { %778 = vrot.lane.b32.xlu2 %v594_v26, %s2633_s18  ;;  %1036 = vrot.lane.b32.xlu0 %v2293_v21, %s2004_s20 }
 0x221   : > { %1038 = vrot.lane.b32.xlu1 %v594_v26, %s2004_s20 }
 0x222   : > { %v643_v34 = vpop.permute.xlu2 %642  ;;  %v681_v35 = vpop.permute.xlu0 %680 }
 0x223   : > { %v657_v36 = vpop.permute.xlu1 %656 }
 0x224   : > { %v824_v45 = vsel %vm820_vm5, %v819_v44, %v657_v36 }
 0x225   : > { %v828_v50 = vsel %vm529_vm1, %v824_v45, %v669_v25 }
 0x226   : > { %v833_v54 = vsel %vm829_vm6, %v828_v50, %v681_v35 }
 0x228   : > { %1040 = vrot.lane.b32.xlu2 %v2245_v62, %s2004_s20  ;;  %1034 = vrot.lane.b32.xlu0 %v569_v23, %s2004_s20 }
 0x229   : > { %1008 = vrot.lane.b32.xlu1 %v875_v37, %s2005_s23 }
 0x22a   : > { %v667_v41 = vpop.permute.xlu2 %666  ;;  %v653_v42 = vpop.permute.xlu0 %652 }
 0x22b   : > { %v693_v43 = vpop.permute.xlu1 %692  ;;  %v874_v46 = vsel %vm529_vm1, %v2293_v21, %v667_v41 }
 0x22c   : > { %v838_v56 = vsel %vm834_vm7, %v833_v54, %v693_v43 }
 0x22d   : > { %v843_v58 = vsel %vm839_vm8, %v838_v56, %v705_v27 }
 0x230   : > { %1004 = vrot.lane.b32.xlu2 %v874_v46, %s2005_s23  ;;  %1000 = vrot.lane.b32.xlu0 %v873_v49, %s2005_s23 }
 0x232   : > { %v703_v52 = vpop.permute.xlu2 %702  ;;  %v689_v53 = vpop.permute.xlu0 %688 }
 0x233   : > { %v629_v55 = vpop.permute.xlu1 %628 }
 0x234   : > { %v812_v62 = vsel %vm810_vm3, %v2269_v13, %v629_v55 }
 0x238   : > { %965 = vrot.lane.b32.xlu0 %v843_v58, %s2636_s19 }
 0x23a   : > { %v2379_v59 = vpop.permute.xlu2 %1032  ;;  %v679_v60 = vpop.permute.xlu0 %678 }
 0x23b   : > { %v641_v61 = vpop.permute.xlu1 %640 }
 0x23c   : > { %v817_v63 = vsel %vm815_vm4, %v812_v62, %v641_v61 }
 0x23d   : > { %v822_v0 = vsel %vm820_vm5, %v817_v63, %v653_v42 }
 0x23e   : > { %v826_v2 = vsel %vm529_vm1, %v822_v0, %v665_v29 }
 0x242   : > { %v721_v1 = vpop.permute.xlu0 %720  ;;  %v745_v4 = vpop.permute.xlu2 %744 }
 0x243   : > { %v677_v3 = vpop.permute.xlu1 %676 }
 0x244   : > { %v831_v5 = vsel %vm829_vm6, %v826_v2, %v677_v3 }
 0x245   : > { %v836_v6 = vsel %vm834_vm7, %v831_v5, %v689_v53 }
 0x246   : > { %v841_v7 = vsel %vm839_vm8, %v836_v6, %v701_v31 }
 0x247   : > { %911 = vrot.lane.b32.xlu1 %v841_v7, %s2636_s19 }
 0x24a   : > { %v757_v8 = vpop.permute.xlu0 %756  ;;  %v781_v10 = vpop.permute.xlu2 %780 }
 0x24b   : > { %v631_v9 = vpop.permute.xlu1 %630 }
 0x24c   : > { %v813_v11 = vsel %vm810_vm3, %v2293_v21, %v631_v9 }
 0x24d   : > { %v818_v15 = vsel %vm815_vm4, %v813_v11, %v643_v34 }
 0x252   : > { %v793_v12 = vpop.permute.xlu0 %792  ;;  %v717_v19 = vpop.permute.xlu2 %716 }
 0x253   : > { %v655_v13 = vpop.permute.xlu1 %654 }
 0x254   : > { %v823_v18 = vsel %vm820_vm5, %v818_v15, %v655_v13 }
 0x255   : > { %v827_v23 = vsel %vm529_vm1, %v823_v18, %v667_v41  ;;  %v872_v18 = vsel %vm529_vm1, %v2191_v48, %v2238_v57  ;;  %v983_v57 = vpop.f32.mrf.mxu1 }
 0x256   : > { %v832_v26 = vsel %vm829_vm6, %v827_v23, %v679_v60 }
 0x25a   : > { %v805_v25 = vpop.permute.xlu0 %804  ;;  %v741_v21 = vpop.permute.xlu2 %740 }
 0x25b   : > { %v691_v27 = vpop.permute.xlu1 %690 }
 0x25c   : > { %v837_v29 = vsel %vm834_vm7, %v832_v26, %v691_v27  ;;  %v929_v26 = vpop.f32.mrf.mxu3 }
 0x25d   : > { %v842_v31 = vsel %vm839_vm8, %v837_v29, %v703_v52 }
 0x25e   : > { %938 = vrot.lane.b32.xlu1 %v842_v31, %s2636_s19 }
 0x262   : > { %v729_v32 = vpop.permute.xlu0 %728  ;;  %v777_v37 = vpop.permute.xlu2 %776 }
 0x263   : > { %v733_v33 = vpop.permute.xlu1 %732  ;;  %v845_v49 = vsel %vm810_vm3, %v717_v19, %v729_v32 }
 0x264   : > { %v847_v34 = vsel %vm810_vm3, %v721_v1, %v733_v33  ;;  %v849_v54 = vsel %vm815_vm4, %v845_v49, %v741_v21 }
 0x265   : > { %v851_v35 = vsel %vm815_vm4, %v847_v34, %v745_v4 }
 0x266   : > { %v855_v41 = vsel %vm820_vm5, %v851_v35, %v757_v8 }
 0x26a   : > { %v765_v36 = vpop.permute.xlu0 %764  ;;  %v719_v55 = vpop.permute.xlu2 %718 }
 0x26b   : > { %v769_v40 = vpop.permute.xlu1 %768  ;;  %v877_v42 = vsel %vm529_vm1, %v717_v19, %v765_v36 }
 0x26c   : > { %v859_v43 = vsel %vm529_vm1, %v855_v41, %v769_v40  ;;  %v879_v44 = vsel %vm529_vm1, %v721_v1, %v769_v40  ;;  %1002 = vrot.lane.b32.xlu1 %v877_v42, %s2005_s23  ;;  %v956_v40 = vpop.f32.mrf.mxu0 }
 0x26d   : > { %v863_v45 = vsel %vm829_vm6, %v859_v43, %v781_v10  ;;  %1010 = vrot.lane.b32.xlu2 %v879_v44, %s2005_s23 }
 0x26e   : > { %v867_v46 = vsel %vm834_vm7, %v863_v45, %v793_v12 }
 0x26f   : > { %v871_v53 = vsel %vm839_vm8, %v867_v46, %v805_v25 }
 0x272   : > { %v801_v50 = vpop.permute.xlu0 %800  ;;  %v743_v1 = vpop.permute.xlu2 %742 }
 0x273   : > { %v753_v52 = vpop.permute.xlu1 %752 }
 0x274   : > { %967 = vrot.lane.b32.xlu1 %v871_v53, %s2636_s19  ;;  %v853_v56 = vsel %vm820_vm5, %v849_v54, %v753_v52 }
 0x275   : > { %v857_v58 = vsel %vm529_vm1, %v853_v56, %v765_v36 }
 0x276   : > { %v861_v62 = vsel %vm829_vm6, %v857_v58, %v777_v37 }
 0x27a   : > { %v731_v60 = vpop.permute.xlu0 %730  ;;  %v779_v8 = vpop.permute.xlu2 %778 }
 0x27b   : > { %v789_v61 = vpop.permute.xlu1 %788  ;;  %v846_v2 = vsel %vm810_vm3, %v719_v55, %v731_v60 }
 0x27c   : > { %v865_v63 = vsel %vm834_vm7, %v861_v62, %v789_v61  ;;  %884 = vrot.lane.b32.xlu1 %v2272_v14, %s2636_s19  ;;  %v850_v5 = vsel %vm815_vm4, %v846_v2, %v743_v1  ;;  %v958_v61 = vpop.f32.mrf.mxu0  ;;  %v985_v2 = vpop.f32.mrf.mxu1 }
 0x27d   : > { %v869_v0 = vsel %vm839_vm8, %v865_v63, %v801_v50  ;;  %v931_v50 = vpop.f32.mrf.mxu3 }
 0x27e   : > { %913 = vrot.lane.b32.xlu2 %v869_v0, %s2636_s19 }
 0x282   : > { %v755_v3 = vpop.permute.xlu0 %754  ;;  %v1041_v33 = vpop.permute.xlu2 %1040 }
 0x283   : > { %v767_v4 = vpop.permute.xlu1 %766  ;;  %v854_v6 = vsel %vm820_vm5, %v850_v5, %v755_v3  ;;  %vm1444_vm5 = vcmask 523264  }
 0x284   : > { %v878_v7 = vsel %vm529_vm1, %v719_v55, %v767_v4  ;;  %998 = vrot.lane.b32.xlu1 %v2281_v16, %s2005_s23  ;;  %v858_v14 = vsel %vm529_vm1, %v854_v6, %v767_v4  ;;  %v860_v16 = vsel %vm829_vm6, %v2285_v20, %v2336_v24 }
 0x285   : > { %1006 = vrot.lane.b32.xlu0 %v878_v7, %s2005_s23  ;;  %v862_v9 = vsel %vm829_vm6, %v858_v14, %v779_v8  ;;  %v864_v15 = vsel %vm834_vm7, %v860_v16, %v2349_v30 }
 0x286   : > { %v868_v19 = vsel %vm839_vm8, %v864_v15, %v2347_v28 }
 0x28a   : > { %v791_v10 = vpop.permute.xlu0 %790  ;;  %v1005_v36 = vpop.permute.xlu2 %1004 }
 0x28b   : > { %v803_v11 = vpop.permute.xlu1 %802  ;;  %v866_v12 = vsel %vm834_vm7, %v862_v9, %v791_v10  ;;  %v902_v10 = vpop.f32.mrf.mxu2 }
 0x28c   : > { %v870_v13 = vsel %vm839_vm8, %v866_v12, %v803_v11 }
 0x28d   : > { %1042 = vrot.lane.b32.xlu0 %v2301_v22, %s2004_s20  ;;  %940 = vrot.lane.b32.xlu2 %v870_v13, %s2636_s19 }
 0x292   : > { %v1037_v22 = vpop.permute.xlu0 %1036 }
 0x293   : > { %v1039_v24 = vpop.permute.xlu1 %1038 }
 0x295   : > { %996 = vrot.lane.b32.xlu0 %v872_v18, %s2005_s23  ;;  %886 = vrot.lane.b32.xlu2 %v868_v19, %s2636_s19 }
 0x29a   : > { %v1035_v20 = vpop.permute.xlu0 %1034 }
 0x29b   : > { %v1009_v23 = vpop.permute.xlu1 %1008 }
 0x29d   : > { %1030 = vrot.lane.b32.xlu0 %v2210_v51, %s2004_s20  ;;  %1028 = vrot.lane.b32.xlu2 %v2191_v48, %s2004_s20 }
 0x2a2   : > { %v1001_v30 = vpop.permute.xlu0 %1000 }
 0x2aa   : > { %v966_v25 = vpop.permute.xlu0 %965 }
 0x2ab   : > { %v984_v28 = vadd.f32 %v983_v57, %v966_v25 }
 0x2ad   : > { %v1026_v21 = vadd.f32 %v1009_v23, %v984_v28 }
 0x2af   : > { %v1058_v51 = vadd.f32 %v1041_v33, %v1026_v21 }
 0x2b1   : > { %v2456_v35 = vmul.f32 0.35355338, %v1058_v51 }
 0x2b3   : > { %v1087_v37 = vsel %vm1068_vm9, %v2456_v35, -inf }
 0x2b9   : > { %v912_v27 = vpop.permute.xlu1 %911 }
 0x2ba   : > { %v930_v29 = vadd.f32 %v929_v26, %v912_v27 }
 0x2bc   : > { %v1022_v31 = vadd.f32 %v1001_v30, %v930_v29 }
 0x2be   : > { %v1054_v32 = vadd.f32 %v2379_v59, %v1022_v31 }
 0x2c0   : > { %v2452_v34 = vmul.f32 0.35355338, %v1054_v32 }
 0x2c2   : > { %v1075_v48 = vsel %vm1068_vm9, %v2452_v34, -inf }
 0x2c3   : > { %1076 = vmax.xlane.f32.xlu1 %v1075_v48 }
 0x2c7   : > { %v1011_v59 = vpop.permute.xlu2 %1010 }
 0x2cb   : > { %1088 = vmax.xlane.f32.xlu1 %v1087_v37 }
 0x2d0   : > { %v939_v41 = vpop.permute.xlu1 %938 }
 0x2d1   : > { %v957_v42 = vadd.f32 %v956_v40, %v939_v41 }
 0x2d3   : > { %v1024_v43 = vadd.f32 %v1005_v36, %v957_v42 }
 0x2d5   : > { %v1056_v44 = vadd.f32 %v1037_v22, %v1024_v43 }
 0x2d7   : > { %v2460_v45 = vmul.f32 0.35355338, %v1056_v44 }
 0x2d8   : > { %v914_v49 = vpop.permute.xlu2 %913 }
 0x2d9   : > { %v1081_v46 = vsel %vm1068_vm9, %v2460_v45, -inf  ;;  %v932_v52 = vadd.f32 %v931_v50, %v914_v49 }
 0x2da   : > { %1082 = vmax.xlane.f32.xlu0 %v1081_v46 }
 0x2de   : > { %v1003_v53 = vpop.permute.xlu1 %1002 }
 0x2df   : > { %v1023_v54 = vadd.f32 %v1003_v53, %v932_v52 }
 0x2e1   : > { %v1055_v55 = vadd.f32 %v1035_v20, %v1023_v54  ;;  %v904_v20 = vpop.f32.mrf.mxu2 }
 0x2e3   : > { %v2464_v56 = vmul.f32 0.35355338, %v1055_v55 }
 0x2e5   : > { %v1078_v58 = vsel %vm1068_vm9, %v2464_v56, -inf }
 0x2e6   : > { %1079 = vmax.xlane.f32.xlu2 %v1078_v58  ;;  %v968_v63 = vpop.permute.xlu1 %967 }
 0x2e7   : > { %v941_v60 = vpop.permute.xlu2 %940  ;;  %v986_v3 = vadd.f32 %v985_v2, %v968_v63 }
 0x2e8   : > { %v959_v62 = vadd.f32 %v958_v61, %v941_v60 }
 0x2e9   : > { %v1027_v7 = vadd.f32 %v1011_v59, %v986_v3 }
 0x2ee   : > { %v885_v11 = vpop.permute.xlu1 %884 }
 0x2ef   : > { %v887_v14 = vpop.permute.xlu2 %886  ;;  %v903_v13 = vadd.f32 %v902_v10, %v885_v11 }
 0x2f0   : > { %v905_v30 = vadd.f32 %v904_v20, %v887_v14 }
 0x2f7   : > { %v1007_v0 = vpop.permute.xlu0 %1006  ;;  %v1029_v19 = vpop.permute.xlu2 %1028 }
 0x2f8   : > { %v1025_v1 = vadd.f32 %v1007_v0, %v959_v62 }
 0x2fa   : > { %v1057_v4 = vadd.f32 %v1039_v24, %v1025_v1  ;;  %v999_v24 = vpop.permute.xlu1 %998 }
 0x2fb   : > { %v1021_v25 = vadd.f32 %v999_v24, %v905_v30 }
 0x2fc   : > { %v1065_v5 = vmul.f32 0.35355338, %v1057_v4 }
 0x2fe   : > { %v1084_v6 = vsel %vm1068_vm9, %v1065_v5, -inf }
 0x2ff   : > { %1085 = vmax.xlane.f32.xlu2 %v1084_v6  ;;  %v1043_v8 = vpop.permute.xlu0 %1042 }
 0x300   : > { %v1059_v9 = vadd.f32 %v1043_v8, %v1027_v7 }
 0x302   : > { %v1067_v12 = vmul.f32 0.35355338, %v1059_v9 }
 0x304   : > { %v1090_v16 = vsel %vm1068_vm9, %v1067_v12, -inf }
 0x307   : > { %v997_v15 = vpop.permute.xlu0 %996  ;;  %1091 = vmax.xlane.f32.xlu2 %v1090_v16 }
 0x308   : > { %v1020_v18 = vadd.f32 %v997_v15, %v903_v13 }
 0x30a   : > { %v1052_v22 = vadd.f32 %v1029_v19, %v1020_v18 }
 0x30c   : > { %v1060_v23 = vmul.f32 0.35355338, %v1052_v22 }
 0x30e   : > { %v1069_v57 = vsel %vm1068_vm9, %v1060_v23, -inf }
 0x30f   : > { %1070 = vmax.xlane.f32.xlu0 %v1069_v57  ;;  %v1031_v26 = vpop.permute.xlu0 %1030 }
 0x310   : > { %v1053_v27 = vadd.f32 %v1031_v26, %v1021_v25 }
 0x312   : > { %v1061_v28 = vmul.f32 0.35355338, %v1053_v27 }
 0x314   : > { %v1072_v29 = vsel %vm1068_vm9, %v1061_v28, -inf }
 0x315   : > { %1073 = vmax.xlane.f32.xlu1 %v1072_v29 }
 0x336   : > { %v1077_v31 = vpop.xlane.xlu1 %1076 }
 0x337   : > { %v1095_v21 = vsub.f32 %v2452_v34, %v1077_v31 }
 0x339   : > { %v1105_v32 = vmul.f32 1.442695, %v1095_v21 }
 0x33b   : > { %1805 = vpow2.f32 %v1105_v32 }
 0x33e   : > { %v1089_v33 = vpop.xlane.xlu1 %1088 }
 0x33f   : > { %v1099_v48 = vsub.f32 %v2456_v35, %v1089_v33 }
 0x341   : > { %v2474_v51 = vpop.eup %1805  ;;  %v1113_v36 = vmul.f32 1.442695, %v1099_v48 }
 0x342   : > { %v1123_v37 = vsel %vm1068_vm9, %v2474_v51, 0.0 }
 0x343   : > { %1807 = vpow2.f32 %v1113_v36  ;;  %1124 = vadd.xlane.f32.xlu2 %v1123_v37 }
 0x349   : > { %v2478_v40 = vpop.eup %1807 }
 0x34a   : > { %v1135_v41 = vsel %vm1068_vm9, %v2478_v40, 0.0 }
 0x34b   : > { %1136 = vadd.xlane.f32.xlu0 %v1135_v41 }
 0x34d   : > { %v1083_v34 = vpop.xlane.xlu0 %1082 }
 0x34e   : > { %v1097_v42 = vsub.f32 %v2460_v45, %v1083_v34 }
 0x350   : > { %v1109_v59 = vmul.f32 1.442695, %v1097_v42 }
 0x352   : > { %1809 = vpow2.f32 %v1109_v59 }
 0x358   : > { %v1810_v35 = vpop.eup %1809 }
 0x359   : > { %v1080_v43 = vpop.xlane.xlu2 %1079  ;;  %v1129_v44 = vsel %vm1068_vm9, %v1810_v35, 0.0 }
 0x35a   : > { %v1096_v46 = vsub.f32 %v2464_v56, %v1080_v43  ;;  %1130 = vadd.xlane.f32.xlu1 %v1129_v44 }
 0x35c   : > { %v1107_v49 = vmul.f32 1.442695, %v1096_v46 }
 0x35e   : > { %1811 = vpow2.f32 %v1107_v49 }
 0x364   : > { %v1812_v50 = vpop.eup %1811 }
 0x365   : > { %v1126_v52 = vsel %vm1068_vm9, %v1812_v50, 0.0 }
 0x366   : > { %1127 = vadd.xlane.f32.xlu0 %v1126_v52 }
 0x372   : > { %v1086_v53 = vpop.xlane.xlu2 %1085 }
 0x373   : > { %v1098_v54 = vsub.f32 %v1065_v5, %v1086_v53 }
 0x375   : > { %v1111_v55 = vmul.f32 1.442695, %v1098_v54 }
 0x377   : > { %1813 = vpow2.f32 %v1111_v55 }
 0x37a   : > { %v1092_v45 = vpop.xlane.xlu2 %1091  ;;  %1220 = vrot.lane.b32.xlu0 %v2189_v47, %s2006_s16 }
 0x37b   : > { %v1100_v58 = vsub.f32 %v1067_v12, %v1092_v45 }
 0x37d   : > { %v1814_v60 = vpop.eup %1813  ;;  %v1115_v61 = vmul.f32 1.442695, %v1100_v58 }
 0x37e   : > { %v1132_v56 = vsel %vm1068_vm9, %v1814_v60, 0.0 }
 0x37f   : > { %1815 = vpow2.f32 %v1115_v61  ;;  %1133 = vadd.xlane.f32.xlu2 %v1132_v56 }
 0x382   : > { %v1071_v0 = vpop.xlane.xlu0 %1070 }
 0x383   : > { %v1093_v1 = vsub.f32 %v1060_v23, %v1071_v0 }
 0x385   : > { %v1816_v62 = vpop.eup %1815  ;;  %v1101_v2 = vmul.f32 1.442695, %v1093_v1 }
 0x386   : > { %v1138_v63 = vsel %vm1068_vm9, %v1816_v62, 0.0 }
 0x387   : > { %1139 = vadd.xlane.f32.xlu1 %v1138_v63  ;;  %1817 = vpow2.f32 %v1101_v2 }
 0x388   : > { %v1074_v4 = vpop.xlane.xlu1 %1073 }
 0x389   : > { %v1094_v5 = vsub.f32 %v1061_v28, %v1074_v4 }
 0x38b   : > { %v1103_v6 = vmul.f32 1.442695, %v1094_v5 }
 0x38d   : > { %v2490_v3 = vpop.eup %1817  ;;  %1819 = vpow2.f32 %v1103_v6 }
 0x38e   : > { %v1117_v47 = vsel %vm1068_vm9, %v2490_v3, 0.0 }
 0x393   : > { %v1820_v7 = vpop.eup %1819 }
 0x394   : > { %v1120_v14 = vsel %vm1068_vm9, %v1820_v7, 0.0 }
 0x397   : > { %1195 = vrot.lane.b32.xlu2 %v2181_v39, %s2006_s16 }
 0x3a0   : > { %1245 = vrot.lane.b32.xlu1 %v2179_v38, %s2006_s16 }
 0x3a4   : > { %1118 = vadd.xlane.f32.xlu0 %v1117_v47 }
 0x3a8   : > { %1170 = vrot.lane.b32.xlu1 %v2169_v17, %s2006_s16 }
 0x3b6   : > { %v1125_v9 = vpop.xlane.xlu2 %1124 }
 0x3be   : > { %v1137_v39 = vpop.xlane.xlu0 %1136 }
 0x3c0   : > { %1121 = vadd.xlane.f32.xlu2 %v1120_v14  ;;  %v1847_v14 = vld [vmem:[%s2154_s17] sm:$0xff] }
 0x3cd   : > { %v1131_v38 = vpop.xlane.xlu1 %1130 }
 0x3d9   : > { %v1128_v8 = vpop.xlane.xlu0 %1127 }
 0x3da   : > { %1821 = vrcp.f32 %v1128_v8 }
 0x3db   : > { %1823 = vrcp.f32 %v1125_v9 }
 0x3dc   : > { %1825 = vrcp.f32 %v1131_v38  ;;  %v1848_v38 = vld [vmem:[%s2154_s17 + $0x8] sm:$0xff]  ;;  %s1694_s17 = sshll.u32 %s2097_s25, 4  ;;  %s1523_s25 = scalar_lea.sflag [#allocation5], %s438_s15 }
 0x3dd   : > { %s1534_s29 = scalar_lea.hbm %s2606_s12, %s1694_s17 }
 0x3de   : > { %s1537_s19 = sshll.u32 %s1534_s29, 4  ;;  %s1538_s19 = int_to_ptr.hbm [resolvable:$true] %s1537_s19 }
 0x3df   : > { %s1923_s16 = sshra.s32 %s1538_s19, 4  ;;  %s1924_s16 = int_to_ptr.hbm [resolvable:$true] %s1923_s16 }
 0x3e0   : > { %v1822_v11 = vpop.eup %1821  ;;  %p1930_p3 = scmp.lt.s32.totalorder %s1924_s16, %s2606_s12 }
 0x3e1   : > { %v1824_v12 = vpop.eup %1823  ;;  %v1152_v17 = vmul.f32 %v1822_v11, %v1812_v50 }
 0x3e2   : > { %v1151_v13 = vmul.f32 %v1824_v12, %v2474_v51  ;;  %v1826_v15 = vpop.eup %1825  ;;  %v2009_v12 = vmov 32.0  }
 0x3e3   : > { %v1160_v18 = vpack.c.bf16 %v1152_v17, %v1152_v17  ;;  %v1153_v22 = vmul.f32 %v1826_v15, %v1810_v35 }
 0x3e4   : > { %v1159_v19 = vpack.c.bf16 %v1151_v13, %v1151_v13 }
 0x3e5   : > { %v1193_v20 = vunpack.c.l.b16 %v1160_v18  ;;  %v1161_v23 = vpack.c.bf16 %v1153_v22, %v1153_v22 }
 0x3e6   : > { %v1192_v30 = vunpack.c.l.b16 %v1159_v19 }
 0x3e7   : > { %v1217_v29 = vunpack.c.l.b16 %v1161_v23 }
 0x3e8   : > { %v1194_v26 = vpack.c.b16 %v1193_v20, %v1192_v30 }
 0x3ec   : > { %v1221_v10 = vpop.permute.xlu0 %1220 }
 0x3ed   : > { %1233 = vmatpush.bf16.msra.mxu0 %v1221_v10 }
 0x3f2   : > { %v1134_v16 = vpop.xlane.xlu2 %1133 }
 0x3f3   : > { %1827 = vrcp.f32 %v1134_v16 }
 0x3f9   : > { %v1828_v24 = vpop.eup %1827 }
 0x3fa   : > { %v1154_v25 = vmul.f32 %v1828_v24, %v1814_v60  ;;  %v1196_v57 = vpop.permute.xlu2 %1195  ;;  %v1140_v28 = vpop.xlane.xlu1 %1139 }
 0x3fb   : > { %1208 = vmatpush.bf16.msra.mxu3 %v1196_v57  ;;  %1829 = vrcp.f32 %v1140_v28 }
 0x3fc   : > { %v1162_v27 = vpack.c.bf16 %v1154_v25, %v1154_v25  ;;  %1831 = vrcp.f32 %v1137_v39 }
 0x3fe   : > { %v1218_v31 = vunpack.c.l.b16 %v1162_v27  ;;  %1651 = vmatmul.msk.bf16.vlgmr.msra.gmra.mxu3 %vm1068_vm9, %v1194_v26 }
 0x400   : > { %v1219_v21 = vpack.c.b16 %v1218_v31, %v1217_v29  ;;  %v1689_v29 = vld [vmem:[#allocation6 + $0x8] sm:$0xff]  ;;  %v1688_v31 = vld [vmem:[#allocation6] sm:$0xff] }
 0x401   : > { %v1830_v32 = vpop.eup %1829 }
 0x402   : > { %1652 = vmatmul.msk.bf16.vlgmr.msra.gmra.mxu0 %vm1068_vm9, %v1219_v21  ;;  %v1832_v33 = vpop.eup %1831  ;;  %v1156_v48 = vmul.f32 %v1830_v32, %v1816_v62 }
 0x403   : > { %v1155_v51 = vmul.f32 %v1832_v33, %v2478_v40 }
 0x404   : > { %v1164_v36 = vpack.c.bf16 %v1156_v48, %v1156_v48 }
 0x405   : > { %v1163_v37 = vpack.c.bf16 %v1155_v51, %v1155_v51 }
 0x406   : > { %v1243_v41 = vunpack.c.l.b16 %v1164_v36 }
 0x407   : > { %v1242_v34 = vunpack.c.l.b16 %v1163_v37 }
 0x409   : > { %v1244_v59 = vpack.c.b16 %v1243_v41, %v1242_v34 }
 0x412   : > { %v1246_v42 = vpop.permute.xlu1 %1245 }
 0x413   : > { %1258 = vmatpush.bf16.msrb.mxu1 %v1246_v42 }
 0x416   : > { %1653 = vmatmul.msk.bf16.vlgmr.msrb.gmra.mxu1 %vm1068_vm9, %v1244_v59 }
 0x417   : > { %v1119_v43 = vpop.xlane.xlu0 %1118 }
 0x418   : > { %1833 = vrcp.f32 %v1119_v43 }
 0x41a   : > { %v1171_v35 = vpop.permute.xlu1 %1170 }
 0x41b   : > { %1183 = vmatpush.bf16.msra.mxu2 %v1171_v35 }
 0x41e   : > { %v1834_v46 = vpop.eup %1833 }
 0x41f   : > { %v1149_v49 = vmul.f32 %v1834_v46, %v2490_v3  ;;  %1397 = vmatpush.bf16.msrb.mxu2 %v1689_v29 }
 0x421   : > { %v1157_v40 = vpack.c.bf16 %v1149_v49, %v1149_v49 }
 0x423   : > { %v1167_v54 = vunpack.c.l.b16 %v1157_v40  ;;  %1398 = vmatpush.bf16.msrb.mxu2 %v1688_v31 }
 0x433   : > { %v1122_v44 = vpop.xlane.xlu2 %1121 }
 0x434   : > { %1835 = vrcp.f32 %v1122_v44 }
 0x435   : > { %1837 = vrcp.f32 %v2009_v12 }
 0x43a   : > { %v1836_v50 = vpop.eup %1835 }
 0x43b   : > { %v1150_v52 = vmul.f32 %v1836_v50, %v1820_v7  ;;  %v1838_v17 = vpop.eup %1837 }
 0x43c   : > { %v1311_v13 = vmul.f32 32.0, %v1838_v17  ;;  %vm1315_vm13 = vweird.f32 %v1838_v17 }
 0x43d   : > { %v1158_v53 = vpack.c.bf16 %v1150_v52, %v1150_v52  ;;  %v1799_v52 = vld [vmem:[%s2602_s8] ss:$0 sm:$0xff] }
 0x43e   : > { %v1312_v16 = vsub.f32 1.0, %v1311_v13 }
 0x43f   : > { %v1168_v55 = vunpack.c.l.b16 %v1158_v53 }
 0x440   : > { %v1313_v15 = vmul.f32 %v1838_v17, %v1312_v16 }
 0x441   : > { %v1169_v45 = vpack.c.b16 %v1168_v55, %v1167_v54 }
 0x442   : > { %v1314_v18 = vadd.f32 %v1838_v17, %v1313_v15 }
 0x443   : > { %1650 = vmatmul.msk.bf16.vlgmr.msra.gmra.mxu2 %vm1068_vm9, %v1169_v45  ;;  %v1800_v45 = vld [vmem:[%s2603_s9] ss:$0 sm:$0xff] }
 0x444   : > { %v2512_v19 = vsel %vm1315_vm13, %v1838_v17, %v1314_v18 }
 0x47f   : > { %v1235_v58 = vpop.f32.mrf.mxu0 }
 0x480   : > { %1280 = vrot.lane.b32.xlu1 %v1235_v58, %s2007_s27 }
 0x481   : > { %v1210_v60 = vpop.f32.mrf.mxu3 }
 0x487   : > { %v1237_v62 = vpop.f32.mrf.mxu0 }
 0x488   : > { %1269 = vrot.lane.b32.xlu1 %v1210_v60, %s2000_s26 }
 0x489   : > { %v1212_v61 = vpop.f32.mrf.mxu3 }
 0x490   : > { %1271 = vrot.lane.b32.xlu1 %v1212_v61, %s2000_s26 }
 0x493   : > { %v1260_v56 = vpop.f32.mrf.mxu1 }
 0x494   : > { %1291 = vrot.lane.b32.xlu0 %v1260_v56, %s2008_s30 }
 0x498   : > { %1282 = vrot.lane.b32.xlu1 %v1237_v62, %s2007_s27  ;;  %s1925_s27 = scalar_lea.hbm %s1924_s16, 16 }
 0x499   : > { %p1926_p0 = scmp.ne.s32.totalorder %s1924_s16, %s1925_s27  ;;  %p1931_p4 = scmp.lt.s32.totalorder %s1929_s28, %s1925_s27 }
 0x49b   : > { %v1262_v63 = vpop.f32.mrf.mxu1  ;;  %p1927_p1 = pnand %p1926_p0, %p2114_p5  ;;  %p1932_p7 = por %p1931_p4, %p1930_p3 }
 0x49c   : > { %1293 = vrot.lane.b32.xlu2 %v1262_v63, %s2008_s30  ;;  %s1630_s30 = sshll.u32 %s438_s15, 4 }
 0x49d   : > { %s440_s20 = scalar_lea.vmem [#allocation8], %s1630_s30  ;;  %p1928_p2 = pneg %p1927_p1 }
 0x49e   : > { %s1535_s23 = sshll.u32 %s440_s20, 4  ;;  %s1536_s23 = int_to_ptr.vmem [resolvable:$true] %s1535_s23 }
 0x49f   : > { %p1933_p8 = pnand %p1932_p7, %p1928_p2 }
 0x4c6   : > { %v1185_v0 = vpop.f32.mrf.mxu2 }
 0x4c7   : > { %1265 = vst.msk [vmem:[#allocation2] sm:$0xff] %vm525_vm2, %v1185_v0  ;;  %v1693_v0 = vld [vmem:[%s2600_s6 + $0x18] sm:$0xff] }
 0x4c8   : > { %1452 = vmatpush.bf16.msrb.mxu3 %v1693_v0 }
 0x4ce   : > { %v1187_v1 = vpop.f32.mrf.mxu2 }
 0x4cf   : > { %1266 = vst.msk [vmem:[#allocation2 + $0x8] sm:$0xff] %vm525_vm2, %v1187_v1  ;;  %v1692_v1 = vld [vmem:[%s2600_s6 + $0x10] sm:$0xff] }
 0x4d0   : > { %1453 = vmatpush.bf16.msrb.mxu3 %v1692_v1 }
 0x4f2   : > { %v1281_v2 = vpop.permute.xlu1 %1280 }
 0x4f6   : > { %v1294_v6 = vpop.permute.xlu2 %1293 }
 0x4fa   : > { %v1270_v3 = vpop.permute.xlu1 %1269 }
 0x4fb   : > { %1276 = vst.msk [vmem:[#allocation2] sm:$0xff] %vm1275_vm10, %v1270_v3  ;;  %v1690_v3 = vld [vmem:[%s2600_s6] sm:$0xff] }
 0x4fc   : > { %1287 = vst.msk [vmem:[#allocation2] sm:$0xff] %vm1286_vm11, %v1281_v2  ;;  %v1691_v2 = vld [vmem:[%s2600_s6 + $0x8] sm:$0xff] }
 0x4fd   : > { %1454 = vmatpush.bf16.msrb.mxu3 %v1691_v2 }
 0x501   : > { %1455 = vmatpush.bf16.msrb.mxu3 %v1690_v3 }
 0x502   : > { %v1272_v47 = vpop.permute.xlu1 %1271 }
 0x503   : > { %1277 = vst.msk [vmem:[#allocation2 + $0x8] sm:$0xff] %vm1275_vm10, %v1272_v47 }
 0x506   : > { %v1292_v4 = vpop.permute.xlu0 %1291 }
 0x507   : > { %1298 = vst.msk [vmem:[#allocation2] sm:$0xff] %vm1297_vm12, %v1292_v4  ;;  %v1801_v4 = vld [vmem:[%s2599_s5] ss:$0 sm:$0xff] }
 0x50a   : > { %v1283_v5 = vpop.permute.xlu1 %1282 }
 0x50b   : > { %1288 = vst.msk [vmem:[#allocation2 + $0x8] sm:$0xff] %vm1286_vm11, %v1283_v5 }
 0x50c   : > { %1299 = vst.msk [vmem:[#allocation2 + $0x8] sm:$0xff] %vm1297_vm12, %v1294_v6 }
 0x50e   : > { %v1300_v7 = vld [vmem:[#allocation2] sm:$0xff] }
 0x50f   : > { %v1302_v39 = vadd.f32 %v1847_v14, %v1300_v7 }
 0x511   : > { %v1304_v8 = vsel %vm470_vm0, %v1302_v39, 0.0 }
 0x512   : > { %1305 = vadd.xlane.f32.xlu1 %v1304_v8 }
 0x513   : > { %v1301_v9 = vld [vmem:[#allocation2 + $0x8] sm:$0xff] }
 0x514   : > { %v1303_v10 = vadd.f32 %v1848_v38, %v1301_v9  ;;  %v1802_v9 = vld [vmem:[%s2601_s7] ss:$0 sm:$0xff] }
 0x516   : > { %v1307_v11 = vsel %vm470_vm0, %v1303_v10, 0.0 }
 0x517   : > { %1308 = vadd.xlane.f32.xlu0 %v1307_v11 }
 0x585   : > { %v1306_v22 = vpop.xlane.xlu1 %1305 }
 0x586   : > { %v1317_v20 = vmul.f32 %v2512_v19, %v1306_v22 }
 0x588   : > { %v1319_v24 = vsub.f32 %v1302_v39, %v1317_v20 }
 0x58a   : > { %v1309_v30 = vpop.xlane.xlu0 %1308  ;;  %v1321_v23 = vmul.f32 %v1319_v24, %v1319_v24 }
 0x58b   : > { %v1318_v25 = vmul.f32 %v2512_v19, %v1309_v30 }
 0x58c   : > { %v1323_v57 = vsel %vm470_vm0, %v1321_v23, 0.0 }
 0x58d   : > { %v1320_v26 = vsub.f32 %v1303_v10, %v1318_v25  ;;  %1324 = vadd.xlane.f32.xlu2 %v1323_v57 }
 0x58f   : > { %v1322_v27 = vmul.f32 %v1320_v26, %v1320_v26 }
 0x591   : > { %v1326_v28 = vsel %vm470_vm0, %v1322_v27, 0.0 }
 0x592   : > { %1327 = vadd.xlane.f32.xlu1 %v1326_v28 }
 0x600   : > { %v1325_v21 = vpop.xlane.xlu2 %1324 }
 0x601   : > { %v1329_v32 = vmul.f32 %v1325_v21, %v2512_v19 }
 0x603   : > { %v1331_v33 = vadd.f32 1e-05, %v1329_v32 }
 0x605   : > { %1839 = vrsqrt.f32 %v1331_v33  ;;  %v1328_v48 = vpop.xlane.xlu1 %1327  ;;  %vm1339_vm15 = vweird.f32 %v1331_v33 }
 0x606   : > { %v1330_v51 = vmul.f32 %v1328_v48, %v2512_v19 }
 0x608   : > { %v1332_v36 = vadd.f32 1e-05, %v1330_v51 }
 0x60a   : > { %1841 = vrsqrt.f32 %v1332_v36  ;;  %vm1349_vm3 = vweird.f32 %v1332_v36 }
 0x60b   : > { %v1840_v37 = vpop.eup %1839 }
 0x60c   : > { %v1334_v41 = vmul.f32 %v1840_v37, %v1331_v33  ;;  %vm1340_vm14 = vweird.f32 %v1840_v37 }
 0x60d   : > { %vm1341_vm1 = vmor %vm1339_vm15, %vm1340_vm14 }
 0x60e   : > { %v1335_v34 = vmul.f32 %v1840_v37, %v1334_v41 }
 0x610   : > { %v1842_v42 = vpop.eup %1841  ;;  %v1336_v59 = vmul.f32 0.5, %v1335_v34 }
 0x611   : > { %v1344_v35 = vmul.f32 %v1842_v42, %v1332_v36  ;;  %vm1350_vm2 = vweird.f32 %v1842_v42 }
 0x612   : > { %v1337_v43 = vsub.f32 1.5, %v1336_v59  ;;  %vm1351_vm4 = vmor %vm1349_vm3, %vm1350_vm2 }
 0x613   : > { %v1345_v44 = vmul.f32 %v1842_v42, %v1344_v35  ;;  %v1803_v35 = vld [vmem:[%s2604_s10] ss:$0 sm:$0xff] }
 0x614   : > { %v1338_v46 = vmul.f32 %v1840_v37, %v1337_v43 }
 0x615   : > { %v1346_v49 = vmul.f32 0.5, %v1345_v44  ;;  %v1804_v44 = vld [vmem:[%s2605_s11] ss:$0 sm:$0xff] }
 0x616   : > { %v1342_v50 = vsel %vm1341_vm1, %v1840_v37, %v1338_v46 }
 0x617   : > { %v1347_v40 = vsub.f32 1.5, %v1346_v49  ;;  %v1353_v53 = vmul.f32 %v1342_v50, %v1319_v24 }
 0x619   : > { %v1348_v54 = vmul.f32 %v1842_v42, %v1347_v40  ;;  %v1359_v58 = vmul.f32 %v1799_v52, %v1353_v53 }
 0x61b   : > { %v1352_v55 = vsel %vm1351_vm4, %v1842_v42, %v1348_v54  ;;  %v1365_v56 = vadd.f32 %v1800_v45, %v1359_v58 }
 0x61c   : > { %v1354_v60 = vmul.f32 %v1352_v55, %v1320_v26 }
 0x61e   : > { %v1360_v61 = vmul.f32 %v1799_v52, %v1354_v60 }
 0x620   : > { %v1366_v62 = vadd.f32 %v1800_v45, %v1360_v61 }
 0x622   : > { %v1367_v63 = vpack.c.bf16 %v1366_v62, %v1365_v56 }
 0x624   : > { %1662 = vmatmul.msk.bf16.vlgmr.msrb.gmra.mxu2 %vm470_vm0, %v1367_v63 }
 0x6a7   : > { %v1400_v47 = vpop.f32.mrf.mxu2 }
 0x6a8   : > { %v1401_v5 = vadd.f32 %v1801_v4, %v1400_v47 }
 0x6aa   : > { %v1405_v14 = vmax.f32 %v1401_v5, 0.0 }
 0x6af   : > { %v1402_v6 = vpop.f32.mrf.mxu2 }
 0x6b0   : > { %v1403_v7 = vadd.f32 %v1801_v4, %v1402_v6 }
 0x6b2   : > { %v1406_v39 = vmax.f32 %v1403_v7, 0.0 }
 0x6b4   : > { %v1407_v8 = vpack.c.bf16 %v1406_v39, %v1405_v14 }
 0x6b6   : > { %1679 = vmatmul.msk.bf16.vlgmr.msrb.gmra.mxu3 %vm1444_vm5, %v1407_v8 }
 0x739   : > { %v1457_v38 = vpop.f32.mrf.mxu3 }
 0x73a   : > { %v1458_v10 = vadd.f32 %v1802_v9, %v1457_v38 }
 0x73c   : > { %v1462_v11 = vadd.f32 %v1458_v10, %v1365_v56 }
 0x73e   : > { %v1464_v12 = vsel %vm470_vm0, %v1462_v11, 0.0 }
 0x73f   : > { %1465 = vadd.xlane.f32.xlu1 %v1464_v12 }
 0x741   : > { %v1459_v17 = vpop.f32.mrf.mxu3 }
 0x742   : > { %v1460_v13 = vadd.f32 %v1802_v9, %v1459_v17 }
 0x744   : > { %v1463_v16 = vadd.f32 %v1460_v13, %v1366_v62 }
 0x746   : > { %v1467_v15 = vsel %vm470_vm0, %v1463_v16, 0.0 }
 0x747   : > { %1468 = vadd.xlane.f32.xlu1 %v1467_v15 }
 0x7b2   : > { %v1466_v18 = vpop.xlane.xlu1 %1465 }
 0x7b3   : > { %v1470_v22 = vmul.f32 %v1466_v18, %v2512_v19 }
 0x7b5   : > { %v1472_v20 = vsub.f32 %v1462_v11, %v1470_v22 }
 0x7b7   : > { %v1474_v24 = vmul.f32 %v1472_v20, %v1472_v20 }
 0x7b9   : > { %v1476_v30 = vsel %vm470_vm0, %v1474_v24, 0.0 }
 0x7ba   : > { %1477 = vadd.xlane.f32.xlu0 %v1476_v30  ;;  %v1469_v23 = vpop.xlane.xlu1 %1468 }
 0x7bb   : > { %v1471_v25 = vmul.f32 %v1469_v23, %v2512_v19 }
 0x7bd   : > { %v1473_v57 = vsub.f32 %v1463_v16, %v1471_v25 }
 0x7bf   : > { %v1475_v26 = vmul.f32 %v1473_v57, %v1473_v57 }
 0x7c1   : > { %v1479_v27 = vsel %vm470_vm0, %v1475_v26, 0.0 }
 0x7c2   : > { %1480 = vadd.xlane.f32.xlu2 %v1479_v27 }
 0x82d   : > { %v1478_v28 = vpop.xlane.xlu0 %1477 }
 0x82e   : > { %v1482_v29 = vmul.f32 %v1478_v28, %v2512_v19 }
 0x830   : > { %v1484_v31 = vadd.f32 1e-05, %v1482_v29 }
 0x832   : > { %1843 = vrsqrt.f32 %v1484_v31  ;;  %vm1492_vm7 = vweird.f32 %v1484_v31 }
 0x835   : > { %v1481_v21 = vpop.xlane.xlu2 %1480 }
 0x836   : > { %v1483_v32 = vmul.f32 %v1481_v21, %v2512_v19 }
 0x838   : > { %v1844_v33 = vpop.eup %1843  ;;  %v1485_v48 = vadd.f32 1e-05, %v1483_v32 }
 0x839   : > { %v1487_v51 = vmul.f32 %v1844_v33, %v1484_v31  ;;  %vm1493_vm6 = vweird.f32 %v1844_v33 }
 0x83a   : > { %1845 = vrsqrt.f32 %v1485_v48  ;;  %vm1494_vm8 = vmor %vm1492_vm7, %vm1493_vm6  ;;  %vm1502_vm10 = vweird.f32 %v1485_v48 }
 0x83b   : > { %v1488_v36 = vmul.f32 %v1844_v33, %v1487_v51 }
 0x83d   : > { %v1489_v37 = vmul.f32 0.5, %v1488_v36 }
 0x83f   : > { %v1490_v41 = vsub.f32 1.5, %v1489_v37 }
 0x840   : > { %v1846_v34 = vpop.eup %1845 }
 0x841   : > { %v1491_v42 = vmul.f32 %v1844_v33, %v1490_v41  ;;  %v1497_v59 = vmul.f32 %v1846_v34, %v1485_v48  ;;  %vm1503_vm9 = vweird.f32 %v1846_v34 }
 0x842   : > { %vm1504_vm11 = vmor %vm1502_vm10, %vm1503_vm9 }
 0x843   : > { %v1495_v19 = vsel %vm1494_vm8, %v1844_v33, %v1491_v42  ;;  %v1498_v43 = vmul.f32 %v1846_v34, %v1497_v59 }
 0x844   : > { %v1506_v46 = vmul.f32 %v1495_v19, %v1472_v20 }
 0x845   : > { %v1499_v49 = vmul.f32 0.5, %v1498_v43 }
 0x846   : > { %v1512_v50 = vmul.f32 %v1803_v35, %v1506_v46 }
 0x847   : > { %v1500_v40 = vsub.f32 1.5, %v1499_v49 }
 0x848   : > { %v1518_v52 = vadd.f32 %v1804_v44, %v1512_v50 }
 0x849   : > { %v1501_v53 = vmul.f32 %v1846_v34, %v1500_v40 }
 0x84a   : > { %1520 = vst.msk [vmem:[%s440_s20] sm:$0xff] %vm470_vm0, %v1518_v52 }
 0x84b   : > { %v1505_v54 = vsel %vm1504_vm11, %v1846_v34, %v1501_v53 }
 0x84c   : > { %v1507_v55 = vmul.f32 %v1505_v54, %v1473_v57 }
 0x84e   : > { %v1513_v45 = vmul.f32 %v1803_v35, %v1507_v55 }
 0x850   : > { %v1519_v58 = vadd.f32 %v1804_v44, %v1513_v45 }
 0x852   : > { %1521 = vst.msk [vmem:[%s440_s20 + $0x8] sm:$0xff] %vm470_vm0, %v1519_v58 }
 0x853   : > { %1936 = shalt.err (!%p1933_p8)
}
 0x854   : > { %s2010_s15 = smov 128  }
 0x855   : > { %1703 = dma.vmem_to_hbm [thread:$0]  (%p2114_p5), %s1536_s23, 256, %s1538_s19, %s1523_s25, %s2010_s15, %s2010_s15, %s2000_s26  }
 0x856 PF: > { %p1720_p9 = scmp.ge.s32.totalorder %s1979_s24, 2  ;;  %s1552_s20 = sand.u32 1, %s1967_s21  }
 0x857   : > { %s1553_s30 = scalar_lea.sflag [#allocation5], %s1552_s20 }
 0x858   : > { %p1713_p10 = pnand %p1720_p9, %p2118_p6 }
 0x85a   : > { %p1714_p11 = pneg %p1713_p10 }
 0x85c   : > { %1962 = dma.done.wait (%p1714_p11), %s1553_s30, 256  }
 0x85d   : > { %1964 = vsyncadd (%p1714_p11), %s1553_s30, 4294967040  ;;  %s2637_s24 = sld [smem:[#allocation13_spill]]  ;;  %s2640_s21 = smov %s1971_s22 }
 0x85e   : > { %s2638_s16 = sld [smem:[#allocation12_spill]] }
 0x85f   : > { %s2639_s23 = sld [smem:[#allocation14_spill]] }
 0x863   : > { %p24_p12 = scmp.ge.s32.totalorder %s2637_s24, 4  }
 0x864   : > { %s2641_s22 = smov %s2638_s16 }
 0x865   :  { %26 = sbr.rel (!%p24_p12) target bundleno = 5 (0x5), region = 112 }
 0x86a   :  { %1559 = vsyncpa [#allocation4], 1 }
 0x86b   :  { %1561 = vsyncpa [#allocation4 + $0x1], 1 }
 0x86c   :  { %1562 = vsyncpa [#allocation7], 1 }
 0x86d   :  { %1563 = vsyncpa [#allocation5], 1 }
 0x86e   :  { %1565 = vsyncpa [#allocation5 + $0x1], 1 }

</bundles_post_ra>
